<compile_context>
chip_gen: v7x
topology: tpu7x:2x2x1
jax: 0.10.0
libtpu: 0.0.40
codegen_flags: <defaults>
</compile_context>

<pallas_src>
import functools

import jax
import jax.numpy as jnp
from jax.experimental import pallas as pl
from jax.experimental.pallas import tpu as pltpu

HIDDEN = 768
DROP_OUT = 0.1  # stands in for float(sys.argv[4])


def _round_up(x, m):
    return ((x + m - 1) // m) * m


def _head_kernel(cls_ref, w1_ref, b1_ref, w2_ref, b2_ref, *rest, use_dropout):
    # cls_ref : (B_TILE, H) bf16  CLS activations for this batch tile
    # w1_ref  : (H, H)      bf16  pre_classifier weight, input-major (y = x @ W1)
    # b1_ref  : (1, H)      f32
    # w2_ref  : (1, H)      f32   classifier weight as a row
    # b2_ref  : (1, 1)      f32
    # mask_ref: (B_TILE, H) f32   pre-scaled dropout keep mask (training only)
    # o_ref   : (B_TILE, 1) f32
    if use_dropout:
        mask_ref, o_ref = rest
    else:
        (o_ref,) = rest

    # pre_classifier: Linear(768, 768), bf16 MXU operands, f32 accumulation.
    h = jnp.dot(cls_ref[...], w1_ref[...], preferred_element_type=jnp.float32)
    h = jnp.maximum(h + b1_ref[...], 0.0)

    # Dropout (training mode): mask already holds {0, 1/keep_prob}.
    if use_dropout:
        h = h * mask_ref[...]

    # classifier: Linear(768, 1) as a VPU multiply + lane reduction
    # (avoids an N=1 MXU pass on a lane-sparse (768, 1) tile).
    o_ref[...] = jnp.sum(h * w2_ref[...], axis=-1, keepdims=True) + b2_ref[...]


def lm_head_forward(hidden_states, w1_bf16, b1, w2_row, b2, *,
                    dropout_mask=None, b_tile=128):
    """hidden_states: (B, S, H) f32 backbone output; returns (B, 1) f32 logits."""
    B, S, H = hidden_states.shape
    use_dropout = dropout_mask is not None

    # CLS slice + bf16 cast at the XLA level (fuses with the backbone output);
    # the kernel only ever sees the (B, H) bf16 rows it needs.
    cls = hidden_states[:, 0, :].astype(jnp.bfloat16)

    # Batch tiling: multiple of 16 (bf16 sublane packing); pad B up to a tile.
    b_tile = min(b_tile, _round_up(B, 16))
    b_pad = pl.cdiv(B, b_tile) * b_tile
    if b_pad != B:
        cls = jnp.pad(cls, ((0, b_pad - B), (0, 0)))
        if use_dropout:
            dropout_mask = jnp.pad(dropout_mask, ((0, b_pad - B), (0, 0)))

    kernel = functools.partial(_head_kernel, use_dropout=use_dropout)

    in_specs = [
        pl.BlockSpec((b_tile, H), lambda i: (i, 0)),  # CLS tile (pipelined per step)
        pl.BlockSpec((H, H), lambda i: (0, 0)),       # W1 bf16 (resident across steps)
        pl.BlockSpec((1, H), lambda i: (0, 0)),       # b1      (resident)
        pl.BlockSpec((1, H), lambda i: (0, 0)),       # W2 row  (resident)
        pl.BlockSpec((1, 1), lambda i: (0, 0)),       # b2      (resident)
    ]
    args = [cls, w1_bf16, b1, w2_row, b2]
    if use_dropout:
        in_specs.append(pl.BlockSpec((b_tile, H), lambda i: (i, 0)))
        args.append(dropout_mask)

    out = pl.pallas_call(
        kernel,
        out_shape=jax.ShapeDtypeStruct((b_pad, 1), jnp.float32),
        grid=(b_pad // b_tile,),
        in_specs=in_specs,
        out_specs=pl.BlockSpec((b_tile, 1), lambda i: (i, 0)),
        compiler_params=pltpu.CompilerParams(
            # Batch tiles are independent -> shard across v7x's 2 TensorCores.
            dimension_semantics=("parallel",),
        ),
    )(*args)

    return out[:B]


if __name__ == "__main__":
    B, S, H = 8, 16, HIDDEN
    key = jax.random.PRNGKey(0)
    k_hid, k_w1, k_b1, k_w2, k_b2, k_drop = jax.random.split(key, 6)

    # Stand-in for the LM backbone output hidden states (B, S, H).
    hidden_states = jax.random.normal(k_hid, (B, S, H), dtype=jnp.float32)

    # Deterministic Linear params (PyTorch-style uniform(+-1/sqrt(fan_in))),
    # stored input-major so the kernel computes x @ W + b.
    bnd1 = 1.0 / (H ** 0.5)
    w1 = jax.random.uniform(k_w1, (H, H), jnp.float32, -bnd1, bnd1)
    b1 = jax.random.uniform(k_b1, (1, H), jnp.float32, -bnd1, bnd1)
    w2 = jax.random.uniform(k_w2, (1, H), jnp.float32, -bnd1, bnd1)  # row layout
    b2 = jax.random.uniform(k_b2, (1, 1), jnp.float32, -bnd1, bnd1)

    # Halve the dominant HBM transfer (W1) and use the MXU-native dtype.
    # (int8 weight streaming would halve it again on v5e/v6e but is not
    #  portable to v7x, whose MXU has no int path -> stay bf16 here.)
    w1_bf16 = w1.astype(jnp.bfloat16)

    # Training-mode dropout mask generated on the host (re-draw per training
    # step in real use); pre-scaled so the kernel does one multiply.
    keep_prob = 1.0 - DROP_OUT
    keep = jax.random.bernoulli(k_drop, keep_prob, (B, H))
    dropout_mask = keep.astype(jnp.float32) / keep_prob

    out_train = lm_head_forward(hidden_states, w1_bf16, b1, w2, b2,
                                dropout_mask=dropout_mask)          # module.train()
    out_eval = lm_head_forward(hidden_states, w1_bf16, b1, w2, b2)  # module.eval()
    jax.block_until_ready((out_train, out_eval))

    assert out_train.shape == (B, 1) and out_train.dtype == jnp.float32
    assert out_eval.shape == (B, 1) and out_eval.dtype == jnp.float32

    # Correctness check of the eval path against a pure-f32 reference
    # (loose tolerance covers bf16 weight + activation quantization).
    ref = jnp.maximum(hidden_states[:, 0, :] @ w1 + b1, 0.0) @ w2.T + b2
    assert jnp.max(jnp.abs(out_eval - ref)) < 0.1

    # Training path sanity: masked reference with the same host mask.
    ref_train = (jnp.maximum(hidden_states[:, 0, :] @ w1 + b1, 0.0)
                 * dropout_mask) @ w2.T + b2
    assert jnp.max(jnp.abs(out_train - ref_train)) < 0.1

    print("KERNEL_OK")
</pallas_src>

<mosaic_0001>
module attributes {stable_mosaic.version = 11 : i64} {
  func.func @_head_kernel(%arg0: i32, %arg1: memref<16x768xbf16, #tpu.memory_space<vmem>>, %arg2: memref<768x768xbf16, #tpu.memory_space<vmem>>, %arg3: memref<1x768xf32, #tpu.memory_space<vmem>>, %arg4: memref<1x768xf32, #tpu.memory_space<vmem>>, %arg5: memref<1x1xf32, #tpu.memory_space<vmem>>, %arg6: memref<16x768xf32, #tpu.memory_space<vmem>>, %arg7: memref<16x1xf32, #tpu.memory_space<vmem>>) attributes {dimension_semantics = [#tpu.dimension_semantics<parallel>], iteration_bounds = array<i64: 1>, scalar_prefetch = 0 : i64, scratch_operands = 0 : i64, tpu.core_type = #tpu.core_type<tc>, window_params = [{transform_indices = @transform_0, window_bounds = array<i64: 16, 768>}, {pipeline_mode = #tpu.pipeline_mode<synchronous>, transform_indices = @transform_1, window_bounds = array<i64: 768, 768>}, {pipeline_mode = #tpu.pipeline_mode<synchronous>, transform_indices = @transform_2, window_bounds = array<i64: 1, 768>}, {pipeline_mode = #tpu.pipeline_mode<synchronous>, transform_indices = @transform_3, window_bounds = array<i64: 1, 768>}, {pipeline_mode = #tpu.pipeline_mode<synchronous>, transform_indices = @transform_4, window_bounds = array<i64: 1, 1>}, {transform_indices = @transform_5, window_bounds = array<i64: 16, 768>}, {transform_indices = @transform_6, window_bounds = array<i64: 16, 1>}]} {
    %c0 = arith.constant 0 : index
    %c0_0 = arith.constant 0 : index
    %0 = vector.load %arg1[%c0, %c0_0] : memref<16x768xbf16, #tpu.memory_space<vmem>>, vector<16x768xbf16>
    %c0_1 = arith.constant 0 : index
    %c0_2 = arith.constant 0 : index
    %1 = vector.load %arg2[%c0_1, %c0_2] : memref<768x768xbf16, #tpu.memory_space<vmem>>, vector<768x768xbf16>
    %cst = arith.constant dense<0.000000e+00> : vector<16x768xf32>
    %2 = tpu.matmul %0, %1, %cst {dimension_numbers = #tpu.dot_dimension_numbers<[1], [0], [0], [1], [0, 0, 1, 1], [], []>} : vector<16x768xbf16>, vector<768x768xbf16>, vector<16x768xf32> -> vector<16x768xf32>
    %c0_3 = arith.constant 0 : index
    %c0_4 = arith.constant 0 : index
    %3 = vector.load %arg3[%c0_3, %c0_4] : memref<1x768xf32, #tpu.memory_space<vmem>>, vector<1x768xf32>
    %4 = vector.broadcast %3 : vector<1x768xf32> to vector<16x768xf32>
    %5 = arith.addf %2, %4 : vector<16x768xf32>
    %cst_5 = arith.constant 0.000000e+00 : f32
    %6 = vector.broadcast %cst_5 : f32 to vector<16x768xf32>
    %7 = arith.maximumf %5, %6 : vector<16x768xf32>
    %c0_6 = arith.constant 0 : index
    %c0_7 = arith.constant 0 : index
    %8 = vector.load %arg6[%c0_6, %c0_7] : memref<16x768xf32, #tpu.memory_space<vmem>>, vector<16x768xf32>
    %9 = arith.mulf %7, %8 : vector<16x768xf32>
    %c0_8 = arith.constant 0 : index
    %c0_9 = arith.constant 0 : index
    %10 = vector.load %arg4[%c0_8, %c0_9] : memref<1x768xf32, #tpu.memory_space<vmem>>, vector<1x768xf32>
    %11 = vector.broadcast %10 : vector<1x768xf32> to vector<16x768xf32>
    %12 = arith.mulf %9, %11 : vector<16x768xf32>
    %cst_10 = arith.constant dense<0.000000e+00> : vector<16xf32>
    %13 = vector.multi_reduction <add>, %12, %cst_10 [1] : vector<16x768xf32> to vector<16xf32>
    %14 = vector.shape_cast %13 : vector<16xf32> to vector<16x1xf32>
    %c0_11 = arith.constant 0 : index
    %c0_12 = arith.constant 0 : index
    %15 = vector.load %arg5[%c0_11, %c0_12] : memref<1x1xf32, #tpu.memory_space<vmem>>, vector<1x1xf32>
    %16 = vector.broadcast %15 : vector<1x1xf32> to vector<16x1xf32>
    %17 = arith.addf %14, %16 : vector<16x1xf32>
    %c0_13 = arith.constant 0 : index
    %c0_14 = arith.constant 0 : index
    %18 = vector.load %arg7[%c0_13, %c0_14] : memref<16x1xf32, #tpu.memory_space<vmem>>, vector<16x1xf32>
    tpu.vector_store %arg7[%c0_13, %c0_14], %17 {strides = array<i32>} : memref<16x1xf32, #tpu.memory_space<vmem>>, vector<16x1xf32>,
    return
  }
  func.func @transform_0(%arg0: i32) -> (i32, i32) {
    %c0_i32 = arith.constant 0 : i32
    %c0_i32_0 = arith.constant 0 : i32
    return %arg0, %c0_i32 : i32, i32
  }
  func.func @transform_1(%arg0: i32) -> (i32, i32) {
    %c0_i32 = arith.constant 0 : i32
    %c0_i32_0 = arith.constant 0 : i32
    %c0_i32_1 = arith.constant 0 : i32
    return %c0_i32, %c0_i32_0 : i32, i32
  }
  func.func @transform_2(%arg0: i32) -> (i32, i32) {
    %c0_i32 = arith.constant 0 : i32
    %c0_i32_0 = arith.constant 0 : i32
    %c0_i32_1 = arith.constant 0 : i32
    return %c0_i32, %c0_i32_0 : i32, i32
  }
  func.func @transform_3(%arg0: i32) -> (i32, i32) {
    %c0_i32 = arith.constant 0 : i32
    %c0_i32_0 = arith.constant 0 : i32
    %c0_i32_1 = arith.constant 0 : i32
    return %c0_i32, %c0_i32_0 : i32, i32
  }
  func.func @transform_4(%arg0: i32) -> (i32, i32) {
    %c0_i32 = arith.constant 0 : i32
    %c0_i32_0 = arith.constant 0 : i32
    %c0_i32_1 = arith.constant 0 : i32
    return %c0_i32, %c0_i32_0 : i32, i32
  }
  func.func @transform_5(%arg0: i32) -> (i32, i32) {
    %c0_i32 = arith.constant 0 : i32
    %c0_i32_0 = arith.constant 0 : i32
    return %arg0, %c0_i32 : i32, i32
  }
  func.func @transform_6(%arg0: i32) -> (i32, i32) {
    %c0_i32 = arith.constant 0 : i32
    %c0_i32_0 = arith.constant 0 : i32
    return %arg0, %c0_i32 : i32, i32
  }
}

</mosaic_0001>

<bundles_post_ra>
// kernel: tpu_custom_call.1
= control target key start
LH: loop header
LB: loop body
LE: loop exit
PB: predicated region body
PF: predicated region fallthrough
CT: control target
= control target key end

     0   :  { %s3455_s0 = inlined_call_operand.hbm [shape: bf16[16,768], index: 0, kind: input, shape index: {}]   ;;  %s3456_s1 = inlined_call_operand.hbm [shape: bf16[768,768], index: 1, kind: input, shape index: {}]   ;;  %s3457_s2 = inlined_call_operand.hbm [shape: f32[1,768], index: 2, kind: input, shape index: {}]   ;;  %s3458_s3 = inlined_call_operand.hbm [shape: f32[1,768], index: 3, kind: input, shape index: {}]   ;;  %s3459_s4 = inlined_call_operand.<no memory space> [shape: f32[1,1], index: 4, kind: input, shape index: {}]   ;;  %s3460_s5 = inlined_call_operand.hbm [shape: f32[16,768], index: 5, kind: input, shape index: {}]   ;;  %s3461_s6 = inlined_call_operand.vmem [shape: f32[16,1], index: 6, kind: output, shape index: {}]  }
   0x1   :  { %v11_v0 = vstv %s3459_s4 }
   0x2   :  { %12 = vst [vmem:[#allocation2] sm:$0x1] %v11_v0 }
   0x3   :  { %13 = vsyncpa [#allocation4], 0 }
   0x4   :  { %14 = vsyncpa [#allocation6], 0 }
   0x5   :  { %15 = vsyncpa [#allocation9], 0  ;;  %s3284_s23 = smov [#allocation5]   ;;  %s3285_s25 = smov [#allocation8]  }
   0x6   :  { %s33_s24 = sshll.u32 %s3284_s23, 4  ;;  %s56_s26 = sshll.u32 %s3285_s25, 4  ;;  %s34_s24 = int_to_ptr.vmem [resolvable:$true] %s33_s24  ;;  %s57_s26 = int_to_ptr.vmem [resolvable:$true] %s56_s26 }
   0x7   :  { %s3168_s29 = scalar_lea.hbm %s3456_s1, 36864 }
   0x8   :  { %p3169_p0 = scmp.ne.s32.totalorder %s3456_s1, %s3168_s29  ;;  %p3172_p1 = scmp.lt.u32.totalorder %s3168_s29, %s3456_s1 }
   0xa   :  { %p3174_p2 = pnand %p3172_p1, %p3169_p0 }
   0xc   :  { %3177 = shalt.err (!%p3174_p2)
}
   0xd   :  { %s3178_s9 = scalar_lea.vmem %s34_s24, 36864  ;;  %p3183_p4 = scmp.lt.s32.totalorder %s34_s24, %s34_s24 }
   0xe   :  { %p3179_p3 = scmp.ne.s32.totalorder %s34_s24, %s3178_s9  ;;  %p3184_p5 = scmp.lt.s32.totalorder %s3178_s9, %s3178_s9 }
  0x10   :  { %p3185_p6 = por %p3184_p5, %p3183_p4 }
  0x12   :  { %p3186_p7 = pnand %p3185_p6, %p3179_p3 }
  0x14   :  { %3189 = shalt.err (!%p3186_p7)
}
  0x15   :  { %s3286_s10 = smov 384   ;;  %s3287_s11 = smov 24  }
  0x16   :  { %39 = dma.hbm_to_vmem [thread:$0]  %s3456_s1, 36864, %s34_s24, [#allocation6], %s3286_s10, %s3286_s10, %s3287_s11  }
  0x17   :  { %s3190_s16 = scalar_lea.hbm %s3458_s3, 96 }
  0x18   :  { %p3191_p8 = scmp.ne.s32.totalorder %s3458_s3, %s3190_s16  ;;  %p3194_p9 = scmp.lt.u32.totalorder %s3190_s16, %s3458_s3 }
  0x1a   :  { %p3196_p10 = pnand %p3194_p9, %p3191_p8 }
  0x1c   :  { %3199 = shalt.err (!%p3196_p10)
}
  0x1d   :  { %s3200_s21 = scalar_lea.vmem %s57_s26, 96  ;;  %p3205_p12 = scmp.lt.s32.totalorder %s57_s26, %s57_s26 }
  0x1e   :  { %p3201_p11 = scmp.ne.s32.totalorder %s57_s26, %s3200_s21  ;;  %p3206_p13 = scmp.lt.s32.totalorder %s3200_s21, %s3200_s21 }
  0x20   :  { %p3207_p0 = por %p3206_p13, %p3205_p12 }
  0x22   :  { %p3208_p1 = pnand %p3207_p0, %p3201_p11 }
  0x24   :  { %3211 = shalt.err (!%p3208_p1)
}
  0x25   :  { %59 = dma.hbm_to_vmem [thread:$0]  %s3458_s3, 96, %s57_s26, [#allocation9]  }
  0x26   :  { %s3288_s23 = smov [#allocation3]   ;;  %s3289_s25 = smov [#allocation7]  }
  0x27   :  { %s21_s24 = sshll.u32 %s3288_s23, 4  ;;  %s46_s27 = sshll.u32 %s3289_s25, 4  ;;  %s22_s24 = int_to_ptr.vmem [resolvable:$true] %s21_s24  ;;  %s47_s27 = int_to_ptr.vmem [resolvable:$true] %s46_s27 }
  0x28   :  { %s3212_s30 = scalar_lea.hbm %s3455_s0, 768 }
  0x29   :  { %p3213_p2 = scmp.ne.s32.totalorder %s3455_s0, %s3212_s30  ;;  %p3216_p3 = scmp.lt.u32.totalorder %s3212_s30, %s3455_s0 }
  0x2b   :  { %p3218_p4 = pnand %p3216_p3, %p3213_p2 }
  0x2d   :  { %3221 = shalt.err (!%p3218_p4)
}
  0x2e   :  { %s3222_s3 = scalar_lea.vmem %s22_s24, 768  ;;  %p3227_p6 = scmp.lt.s32.totalorder %s22_s24, %s22_s24 }
  0x2f   :  { %p3223_p5 = scmp.ne.s32.totalorder %s22_s24, %s3222_s3  ;;  %p3228_p7 = scmp.lt.s32.totalorder %s3222_s3, %s3222_s3 }
  0x31   :  { %p3229_p8 = por %p3228_p7, %p3227_p6 }
  0x33   :  { %p3230_p9 = pnand %p3229_p8, %p3223_p5 }
  0x35   :  { %3233 = shalt.err (!%p3230_p9)
}
  0x36   :  { %27 = dma.hbm_to_vmem [thread:$0]  %s3455_s0, 768, %s22_s24, [#allocation4], %s3286_s10, %s3286_s10, %s3287_s11  }
  0x37   :  { %s3234_s15 = scalar_lea.hbm %s3457_s2, 96 }
  0x38   :  { %p3235_p10 = scmp.ne.s32.totalorder %s3457_s2, %s3234_s15  ;;  %p3238_p11 = scmp.lt.u32.totalorder %s3234_s15, %s3457_s2 }
  0x3a   :  { %p3240_p12 = pnand %p3238_p11, %p3235_p10 }
  0x3c   :  { %3243 = shalt.err (!%p3240_p12)
}
  0x3d   :  { %s3244_s20 = scalar_lea.vmem %s47_s27, 96  ;;  %p3249_p0 = scmp.lt.s32.totalorder %s47_s27, %s47_s27 }
  0x3e   :  { %p3245_p13 = scmp.ne.s32.totalorder %s47_s27, %s3244_s20  ;;  %p3250_p1 = scmp.lt.s32.totalorder %s3244_s20, %s3244_s20 }
  0x40   :  { %p3251_p2 = por %p3250_p1, %p3249_p0 }
  0x42   :  { %p3252_p3 = pnand %p3251_p2, %p3245_p13 }
  0x44   :  { %3255 = shalt.err (!%p3252_p3)
}
  0x45   :  { %49 = dma.hbm_to_vmem [thread:$0]  %s3457_s2, 96, %s47_s27, [#allocation6]  }
  0x46   :  { %s3290_s11 = smov [#allocation10]   ;;  %s3256_s23 = scalar_lea.hbm %s3460_s5, 1536 }
  0x47   :  { %s67_s21 = sshll.u32 %s3290_s11, 4  ;;  %p3257_p4 = scmp.ne.s32.totalorder %s3460_s5, %s3256_s23  ;;  %s68_s21 = int_to_ptr.vmem [resolvable:$true] %s67_s21 }
  0x48   :  { %p3260_p5 = scmp.lt.u32.totalorder %s3256_s23, %s3460_s5 }
  0x4a   :  { %p3262_p6 = pnand %p3260_p5, %p3257_p4 }
  0x4c   :  { %3265 = shalt.err (!%p3262_p6)
}
  0x4d   :  { %s3266_s30 = scalar_lea.vmem %s68_s21, 1536  ;;  %p3271_p8 = scmp.lt.s32.totalorder %s68_s21, %s68_s21 }
  0x4e   :  { %p3267_p7 = scmp.ne.s32.totalorder %s68_s21, %s3266_s30  ;;  %p3272_p9 = scmp.lt.s32.totalorder %s3266_s30, %s3266_s30 }
  0x50   :  { %p3273_p10 = por %p3272_p9, %p3271_p8 }
  0x52   :  { %p3274_p11 = pnand %p3273_p10, %p3267_p7 }
  0x54   :  { %3277 = shalt.err (!%p3274_p11)
}
  0x55   :  { %s3291_s2 = smov 768   ;;  %s3292_s27 = smov 48  }
  0x56   :  { %73 = dma.hbm_to_vmem [thread:$0]  %s3460_s5, 1536, %s68_s21, [#allocation9], %s3291_s2, %s3291_s2, %s3292_s27  }
  0x57   :  { %3278 = dma.done.wait [#allocation4], 768  }
  0x58   :  { %3279 = vsyncadd [#allocation4], 4294966528 }
  0x59   :  { %3280 = dma.done.wait [#allocation6], 36960  }
  0x5a   :  { %3281 = vsyncadd [#allocation6], 4294930336 }
  0x5b   :  { %3282 = dma.done.wait [#allocation9], 1632  }
  0x5c   :  { %3283 = vsyncadd [#allocation9], 4294965664  ;;  %v2725_v1 = vld [vmem:[#allocation5 + $0x4] ss:$24 sps:$4 sm:$0xff]   ;;  %v2729_v3 = vld [vmem:[#allocation5] ss:$24 sps:$4 sm:$0xff]  }
  0x5d   :  { %v2727_v2 = vld [vmem:[#allocation5 + $0x304] ss:$24 sps:$4 sm:$0xff]   ;;  %1885 = vmatprep.subr.bf16.mxu1 %v2725_v1  ;;  %v2730_v4 = vld [vmem:[#allocation5 + $0x300] ss:$24 sps:$4 sm:$0xff]   ;;  %v2731_v5 = vld [vmem:[#allocation5 + $0x34] ss:$24 sps:$4 sm:$0xff]  }
  0x5e   :  { %1928 = vmatprep.subr.bf16.mxu0 %v2727_v2  ;;  %1886 = vmatpush1.bf16.msra.mxu1 %v2729_v3  ;;  %v2733_v6 = vld [vmem:[#allocation5 + $0x334] ss:$24 sps:$4 sm:$0xff]   ;;  %v2735_v7 = vld [vmem:[#allocation5 + $0x30] ss:$24 sps:$4 sm:$0xff]   ;;  %v2737_v9 = vld [vmem:[#allocation5 + $0x64] ss:$24 sps:$4 sm:$0xff]  }
  0x5f   :  { %1929 = vmatpush1.bf16.msra.mxu0 %v2730_v4  ;;  %1887 = vmatprep.subr.bf16.mxu1 %v2731_v5  ;;  %v2736_v8 = vld [vmem:[#allocation5 + $0x330] ss:$24 sps:$4 sm:$0xff]   ;;  %v2739_v10 = vld [vmem:[#allocation5 + $0x364] ss:$24 sps:$4 sm:$0xff]   ;;  %v2741_v11 = vld [vmem:[#allocation5 + $0x60] ss:$24 sps:$4 sm:$0xff]  }
  0x60   :  { %1930 = vmatprep.subr.bf16.mxu0 %v2733_v6  ;;  %v2742_v12 = vld [vmem:[#allocation5 + $0x360] ss:$24 sps:$4 sm:$0xff]   ;;  %v2743_v13 = vld [vmem:[#allocation5 + $0x94] ss:$24 sps:$4 sm:$0xff]   ;;  %v2747_v15 = vld [vmem:[#allocation5 + $0x90] ss:$24 sps:$4 sm:$0xff]  }
  0x61   :  { %v2745_v14 = vld [vmem:[#allocation5 + $0x394] ss:$24 sps:$4 sm:$0xff]   ;;  %v2748_v16 = vld [vmem:[#allocation5 + $0x390] ss:$24 sps:$4 sm:$0xff]   ;;  %v2749_v17 = vld [vmem:[#allocation5 + $0xc4] ss:$24 sps:$4 sm:$0xff]  }
  0x62   :  { %1888 = vmatpush1.bf16.msra.mxu1 %v2735_v7  ;;  %v2751_v18 = vld [vmem:[#allocation5 + $0x3c4] ss:$24 sps:$4 sm:$0xff]   ;;  %v2753_v19 = vld [vmem:[#allocation5 + $0xc0] ss:$24 sps:$4 sm:$0xff]   ;;  %v2755_v21 = vld [vmem:[#allocation5 + $0xf4] ss:$24 sps:$4 sm:$0xff]  }
  0x63   :  { %1931 = vmatpush1.bf16.msra.mxu0 %v2736_v8  ;;  %1889 = vmatprep.subr.bf16.mxu1 %v2737_v9  ;;  %v2754_v20 = vld [vmem:[#allocation5 + $0x3c0] ss:$24 sps:$4 sm:$0xff]   ;;  %v2757_v22 = vld [vmem:[#allocation5 + $0x3f4] ss:$24 sps:$4 sm:$0xff]   ;;  %v2759_v23 = vld [vmem:[#allocation5 + $0xf0] ss:$24 sps:$4 sm:$0xff]  }
  0x64   :  { %1932 = vmatprep.subr.bf16.mxu0 %v2739_v10  ;;  %v2760_v24 = vld [vmem:[#allocation5 + $0x3f0] ss:$24 sps:$4 sm:$0xff]   ;;  %v2761_v25 = vld [vmem:[#allocation5 + $0x124] ss:$24 sps:$4 sm:$0xff]   ;;  %v2765_v27 = vld [vmem:[#allocation5 + $0x120] ss:$24 sps:$4 sm:$0xff]  }
  0x65   :  { %v2763_v26 = vld [vmem:[#allocation5 + $0x424] ss:$24 sps:$4 sm:$0xff]   ;;  %v2766_v28 = vld [vmem:[#allocation5 + $0x420] ss:$24 sps:$4 sm:$0xff]   ;;  %v2767_v29 = vld [vmem:[#allocation5 + $0x154] ss:$24 sps:$4 sm:$0xff]  }
  0x66   :  { %1890 = vmatpush1.bf16.msra.mxu1 %v2741_v11  ;;  %v2769_v30 = vld [vmem:[#allocation5 + $0x454] ss:$24 sps:$4 sm:$0xff]   ;;  %v2771_v31 = vld [vmem:[#allocation5 + $0x150] ss:$24 sps:$4 sm:$0xff]   ;;  %v2773_v33 = vld [vmem:[#allocation5 + $0x184] ss:$24 sps:$4 sm:$0xff]  }
  0x67   :  { %1933 = vmatpush1.bf16.msra.mxu0 %v2742_v12  ;;  %1891 = vmatprep.subr.bf16.mxu1 %v2743_v13  ;;  %v2772_v32 = vld [vmem:[#allocation5 + $0x450] ss:$24 sps:$4 sm:$0xff]   ;;  %v2775_v34 = vld [vmem:[#allocation5 + $0x484] ss:$24 sps:$4 sm:$0xff]   ;;  %v2777_v35 = vld [vmem:[#allocation5 + $0x180] ss:$24 sps:$4 sm:$0xff]  }
  0x68   :  { %1934 = vmatprep.subr.bf16.mxu0 %v2745_v14  ;;  %v2778_v36 = vld [vmem:[#allocation5 + $0x480] ss:$24 sps:$4 sm:$0xff]   ;;  %v2779_v37 = vld [vmem:[#allocation5 + $0x1b4] ss:$24 sps:$4 sm:$0xff]   ;;  %v2783_v39 = vld [vmem:[#allocation5 + $0x1b0] ss:$24 sps:$4 sm:$0xff]  }
  0x69   :  { %v2781_v38 = vld [vmem:[#allocation5 + $0x4b4] ss:$24 sps:$4 sm:$0xff]   ;;  %v2784_v40 = vld [vmem:[#allocation5 + $0x4b0] ss:$24 sps:$4 sm:$0xff]   ;;  %v2785_v41 = vld [vmem:[#allocation5 + $0x1e4] ss:$24 sps:$4 sm:$0xff]  }
  0x6a   :  { %1892 = vmatpush1.bf16.msra.mxu1 %v2747_v15  ;;  %v2787_v42 = vld [vmem:[#allocation5 + $0x4e4] ss:$24 sps:$4 sm:$0xff]   ;;  %v2789_v43 = vld [vmem:[#allocation5 + $0x1e0] ss:$24 sps:$4 sm:$0xff]   ;;  %v2791_v45 = vld [vmem:[#allocation5 + $0x214] ss:$24 sps:$4 sm:$0xff]  }
  0x6b   :  { %1935 = vmatpush1.bf16.msra.mxu0 %v2748_v16  ;;  %1893 = vmatprep.subr.bf16.mxu1 %v2749_v17  ;;  %v2790_v44 = vld [vmem:[#allocation5 + $0x4e0] ss:$24 sps:$4 sm:$0xff]   ;;  %v2793_v46 = vld [vmem:[#allocation5 + $0x514] ss:$24 sps:$4 sm:$0xff]   ;;  %v2795_v47 = vld [vmem:[#allocation5 + $0x210] ss:$24 sps:$4 sm:$0xff]  }
  0x6c   :  { %1936 = vmatprep.subr.bf16.mxu0 %v2751_v18  ;;  %v2796_v48 = vld [vmem:[#allocation5 + $0x510] ss:$24 sps:$4 sm:$0xff]   ;;  %v3397_v49 = vld [vmem:[#allocation3 + $0x4] ss:$24 sps:$4 sm:$0xff]   ;;  %v2797_v51 = vld [vmem:[#allocation5 + $0x244] ss:$24 sps:$4 sm:$0xff]  }
  0x6d   :  { %v3399_v50 = vld [vmem:[#allocation3 + $0xc] ss:$24 sps:$4 sm:$0xff]   ;;  %1917 = vmatprep.mubr.bf16.mxu1 %v3397_v49  ;;  %v2801_v53 = vld [vmem:[#allocation5 + $0x240] ss:$24 sps:$4 sm:$0xff]   ;;  %v2807_v57 = vld [vmem:[#allocation5 + $0x270] ss:$24 sps:$4 sm:$0xff]  }
  0x6e   :  { %1894 = vmatpush1.bf16.msra.mxu1 %v2753_v19  ;;  %v2799_v52 = vld [vmem:[#allocation5 + $0x544] ss:$24 sps:$4 sm:$0xff]   ;;  %1960 = vmatprep.mubr.bf16.mxu0 %v3399_v50  ;;  %v2802_v54 = vld [vmem:[#allocation5 + $0x540] ss:$24 sps:$4 sm:$0xff]   ;;  %v2803_v55 = vld [vmem:[#allocation5 + $0x274] ss:$24 sps:$4 sm:$0xff]  }
  0x6f   :  { %1937 = vmatpush1.bf16.msra.mxu0 %v2754_v20  ;;  %1895 = vmatprep.subr.bf16.mxu1 %v2755_v21  ;;  %v2805_v56 = vld [vmem:[#allocation5 + $0x574] ss:$24 sps:$4 sm:$0xff]   ;;  %v2808_v58 = vld [vmem:[#allocation5 + $0x570] ss:$24 sps:$4 sm:$0xff]   ;;  %v2809_v59 = vld [vmem:[#allocation5 + $0x2a4] ss:$24 sps:$4 sm:$0xff]  }
  0x70   :  { %1938 = vmatprep.subr.bf16.mxu0 %v2757_v22  ;;  %v2811_v60 = vld [vmem:[#allocation5 + $0x5a4] ss:$24 sps:$4 sm:$0xff]   ;;  %v2813_v61 = vld [vmem:[#allocation5 + $0x2a0] ss:$24 sps:$4 sm:$0xff]   ;;  %v2815_v63 = vld [vmem:[#allocation5 + $0x2d4] ss:$24 sps:$4 sm:$0xff]  }
  0x71   :  { %v2814_v62 = vld [vmem:[#allocation5 + $0x5a0] ss:$24 sps:$4 sm:$0xff]   ;;  %v2817_v0 = vld [vmem:[#allocation5 + $0x5d4] ss:$24 sps:$4 sm:$0xff]   ;;  %v2819_v1 = vld [vmem:[#allocation5 + $0x2d0] ss:$24 sps:$4 sm:$0xff]  }
  0x72   :  { %1896 = vmatpush1.bf16.msra.mxu1 %v2759_v23  ;;  %v2820_v2 = vld [vmem:[#allocation5 + $0x5d0] ss:$24 sps:$4 sm:$0xff]   ;;  %v2827_v3 = vld [vmem:[#allocation5 + $0x604] ss:$24 sps:$4 sm:$0xff]   ;;  %v2825_v5 = vld [vmem:[#allocation5 + $0x600] ss:$24 sps:$4 sm:$0xff]  }
  0x73   :  { %1939 = vmatpush1.bf16.msra.mxu0 %v2760_v24  ;;  %1897 = vmatprep.subr.bf16.mxu1 %v2761_v25  ;;  %v2830_v4 = vld [vmem:[#allocation5 + $0xc] ss:$24 sps:$4 sm:$0xff]   ;;  %v2828_v6 = vld [vmem:[#allocation5 + $0x8] ss:$24 sps:$4 sm:$0xff]   ;;  %v3405_v8 = vld [vmem:[#allocation3 + $0x8] ss:$24 sps:$4 sm:$0xff]  }
  0x74   :  { %1940 = vmatprep.subr.bf16.mxu0 %v2763_v26  ;;  %v3403_v7 = vld [vmem:[#allocation3] ss:$24 sps:$4 sm:$0xff]   ;;  %v2835_v9 = vld [vmem:[#allocation5 + $0x634] ss:$24 sps:$4 sm:$0xff]   ;;  %v2841_v13 = vld [vmem:[#allocation5 + $0x664] ss:$24 sps:$4 sm:$0xff]  }
  0x75   :  { %v2838_v10 = vld [vmem:[#allocation5 + $0x3c] ss:$24 sps:$4 sm:$0xff]   ;;  %v2833_v11 = vld [vmem:[#allocation5 + $0x630] ss:$24 sps:$4 sm:$0xff]   ;;  %v2844_v14 = vld [vmem:[#allocation5 + $0x6c] ss:$24 sps:$4 sm:$0xff]  }
  0x76   :  { %1898 = vmatpush1.bf16.msra.mxu1 %v2765_v27  ;;  %v2836_v12 = vld [vmem:[#allocation5 + $0x38] ss:$24 sps:$4 sm:$0xff]   ;;  %v2842_v16 = vld [vmem:[#allocation5 + $0x68] ss:$24 sps:$4 sm:$0xff]   ;;  %v2847_v17 = vld [vmem:[#allocation5 + $0x694] ss:$24 sps:$4 sm:$0xff]  }
  0x77   :  { %1941 = vmatpush1.bf16.msra.mxu0 %v2766_v28  ;;  %1899 = vmatprep.subr.bf16.mxu1 %v2767_v29  ;;  %v2839_v15 = vld [vmem:[#allocation5 + $0x660] ss:$24 sps:$4 sm:$0xff]   ;;  %v2850_v18 = vld [vmem:[#allocation5 + $0x9c] ss:$24 sps:$4 sm:$0xff]   ;;  %v2845_v19 = vld [vmem:[#allocation5 + $0x690] ss:$24 sps:$4 sm:$0xff]  }
  0x78   :  { %1942 = vmatprep.subr.bf16.mxu0 %v2769_v30  ;;  %v2848_v20 = vld [vmem:[#allocation5 + $0x98] ss:$24 sps:$4 sm:$0xff]   ;;  %v2853_v21 = vld [vmem:[#allocation5 + $0x6c4] ss:$24 sps:$4 sm:$0xff]   ;;  %v2854_v24 = vld [vmem:[#allocation5 + $0xc8] ss:$24 sps:$4 sm:$0xff]  }
  0x79   :  { %v2856_v22 = vld [vmem:[#allocation5 + $0xcc] ss:$24 sps:$4 sm:$0xff]   ;;  %v2851_v23 = vld [vmem:[#allocation5 + $0x6c0] ss:$24 sps:$4 sm:$0xff]   ;;  %v2862_v26 = vld [vmem:[#allocation5 + $0xfc] ss:$24 sps:$4 sm:$0xff]  }
  0x7a   :  { %1900 = vmatpush1.bf16.msra.mxu1 %v2771_v31  ;;  %v2859_v25 = vld [vmem:[#allocation5 + $0x6f4] ss:$24 sps:$4 sm:$0xff]   ;;  %v2857_v27 = vld [vmem:[#allocation5 + $0x6f0] ss:$24 sps:$4 sm:$0xff]   ;;  %v2865_v29 = vld [vmem:[#allocation5 + $0x724] ss:$24 sps:$4 sm:$0xff]  }
  0x7b   :  { %1943 = vmatpush1.bf16.msra.mxu0 %v2772_v32  ;;  %1901 = vmatprep.subr.bf16.mxu1 %v2773_v33  ;;  %v2860_v28 = vld [vmem:[#allocation5 + $0xf8] ss:$24 sps:$4 sm:$0xff]   ;;  %v2868_v30 = vld [vmem:[#allocation5 + $0x12c] ss:$24 sps:$4 sm:$0xff]   ;;  %v2866_v32 = vld [vmem:[#allocation5 + $0x128] ss:$24 sps:$4 sm:$0xff]  }
  0x7c   :  { %1944 = vmatprep.subr.bf16.mxu0 %v2775_v34  ;;  %v2863_v31 = vld [vmem:[#allocation5 + $0x720] ss:$24 sps:$4 sm:$0xff]   ;;  %v2871_v33 = vld [vmem:[#allocation5 + $0x754] ss:$24 sps:$4 sm:$0xff]   ;;  %vm2375_vm0 = vcmask 7168  }
  0x7d   :  { %v2874_v34 = vld [vmem:[#allocation5 + $0x15c] ss:$24 sps:$4 sm:$0xff]  }
  0x7e   :  { %1902 = vmatpush1.bf16.msra.mxu1 %v2777_v35  ;;  %v3410_v35 = vld [vmem:[#allocation3 + $0x14] ss:$24 sps:$4 sm:$0xff]  }
  0x7f   :  { %1945 = vmatpush1.bf16.msra.mxu0 %v2778_v36  ;;  %1903 = vmatprep.subr.bf16.mxu1 %v2779_v37  ;;  %v2869_v36 = vld [vmem:[#allocation5 + $0x750] ss:$24 sps:$4 sm:$0xff]  }
  0x80   :  { %1946 = vmatprep.subr.bf16.mxu0 %v2781_v38  ;;  %v2872_v37 = vld [vmem:[#allocation5 + $0x158] ss:$24 sps:$4 sm:$0xff]   ;;  %v2877_v38 = vld [vmem:[#allocation5 + $0x784] ss:$24 sps:$4 sm:$0xff]  }
  0x82   :  { %1904 = vmatpush1.bf16.msra.mxu1 %v2783_v39  ;;  %v2880_v39 = vld [vmem:[#allocation5 + $0x18c] ss:$24 sps:$4 sm:$0xff]  }
  0x83   :  { %1947 = vmatpush1.bf16.msra.mxu0 %v2784_v40  ;;  %1905 = vmatprep.subr.bf16.mxu1 %v2785_v41  ;;  %v2875_v40 = vld [vmem:[#allocation5 + $0x780] ss:$24 sps:$4 sm:$0xff]  }
  0x84   :  { %1948 = vmatprep.subr.bf16.mxu0 %v2787_v42  ;;  %v2878_v41 = vld [vmem:[#allocation5 + $0x188] ss:$24 sps:$4 sm:$0xff]   ;;  %v2883_v42 = vld [vmem:[#allocation5 + $0x7b4] ss:$24 sps:$4 sm:$0xff]  }
  0x86   :  { %1906 = vmatpush1.bf16.msra.mxu1 %v2789_v43  ;;  %v2886_v43 = vld [vmem:[#allocation5 + $0x1bc] ss:$24 sps:$4 sm:$0xff]  }
  0x87   :  { %1949 = vmatpush1.bf16.msra.mxu0 %v2790_v44  ;;  %1907 = vmatprep.subr.bf16.mxu1 %v2791_v45  ;;  %v2881_v44 = vld [vmem:[#allocation5 + $0x7b0] ss:$24 sps:$4 sm:$0xff]  }
  0x88   :  { %1950 = vmatprep.subr.bf16.mxu0 %v2793_v46  ;;  %v2884_v45 = vld [vmem:[#allocation5 + $0x1b8] ss:$24 sps:$4 sm:$0xff]   ;;  %v2889_v46 = vld [vmem:[#allocation5 + $0x7e4] ss:$24 sps:$4 sm:$0xff]  }
  0x8a   :  { %1908 = vmatpush1.bf16.msra.mxu1 %v2795_v47  ;;  %v2892_v47 = vld [vmem:[#allocation5 + $0x1ec] ss:$24 sps:$4 sm:$0xff]  }
  0x8b   :  { %1951 = vmatpush1.bf16.msra.mxu0 %v2796_v48  ;;  %1909 = vmatprep.subr.bf16.mxu1 %v2797_v51  ;;  %v2887_v48 = vld [vmem:[#allocation5 + $0x7e0] ss:$24 sps:$4 sm:$0xff]  }
  0x8c   :  { %1952 = vmatprep.subr.bf16.mxu0 %v2799_v52  ;;  %v2890_v51 = vld [vmem:[#allocation5 + $0x1e8] ss:$24 sps:$4 sm:$0xff]   ;;  %v2895_v52 = vld [vmem:[#allocation5 + $0x814] ss:$24 sps:$4 sm:$0xff]  }
  0x8e   :  { %1910 = vmatpush1.bf16.msra.mxu1 %v2801_v53  ;;  %v2898_v53 = vld [vmem:[#allocation5 + $0x21c] ss:$24 sps:$4 sm:$0xff]  }
  0x8f   :  { %1953 = vmatpush1.bf16.msra.mxu0 %v2802_v54  ;;  %1911 = vmatprep.subr.bf16.mxu1 %v2803_v55  ;;  %v2893_v54 = vld [vmem:[#allocation5 + $0x810] ss:$24 sps:$4 sm:$0xff]  }
  0x90   :  { %1954 = vmatprep.subr.bf16.mxu0 %v2805_v56  ;;  %v2896_v55 = vld [vmem:[#allocation5 + $0x218] ss:$24 sps:$4 sm:$0xff]   ;;  %v2901_v56 = vld [vmem:[#allocation5 + $0x844] ss:$24 sps:$4 sm:$0xff]  }
  0x92   :  { %1912 = vmatpush1.bf16.msra.mxu1 %v2807_v57  ;;  %v2904_v57 = vld [vmem:[#allocation5 + $0x24c] ss:$24 sps:$4 sm:$0xff]  }
  0x93   :  { %1955 = vmatpush1.bf16.msra.mxu0 %v2808_v58  ;;  %1913 = vmatprep.subr.bf16.mxu1 %v2809_v59  ;;  %v2899_v58 = vld [vmem:[#allocation5 + $0x840] ss:$24 sps:$4 sm:$0xff]  }
  0x94   :  { %1956 = vmatprep.subr.bf16.mxu0 %v2811_v60  ;;  %v2902_v59 = vld [vmem:[#allocation5 + $0x248] ss:$24 sps:$4 sm:$0xff]   ;;  %v2907_v60 = vld [vmem:[#allocation5 + $0x874] ss:$24 sps:$4 sm:$0xff]  }
  0x96   :  { %1914 = vmatpush1.bf16.msra.mxu1 %v2813_v61  ;;  %v2910_v61 = vld [vmem:[#allocation5 + $0x27c] ss:$24 sps:$4 sm:$0xff]  }
  0x97   :  { %1957 = vmatpush1.bf16.msra.mxu0 %v2814_v62  ;;  %1915 = vmatprep.subr.bf16.mxu1 %v2815_v63  ;;  %v2905_v62 = vld [vmem:[#allocation5 + $0x870] ss:$24 sps:$4 sm:$0xff]  }
  0x98   :  { %1958 = vmatprep.subr.bf16.mxu0 %v2817_v0  ;;  %v2908_v63 = vld [vmem:[#allocation5 + $0x278] ss:$24 sps:$4 sm:$0xff]   ;;  %v2913_v0 = vld [vmem:[#allocation5 + $0x8a4] ss:$24 sps:$4 sm:$0xff]  }
  0x9a   :  { %1916 = vmatpush1.bf16.msra.mxu1 %v2819_v1  ;;  %v2916_v1 = vld [vmem:[#allocation5 + $0x2ac] ss:$24 sps:$4 sm:$0xff]  }
  0x9b   :  { %1959 = vmatpush1.bf16.msra.mxu0 %v2820_v2  ;;  %2014 = vmatprep.subr.bf16.mxu1 %v2830_v4  ;;  %v2911_v2 = vld [vmem:[#allocation5 + $0x8a0] ss:$24 sps:$4 sm:$0xff]   ;;  %v2919_v4 = vld [vmem:[#allocation5 + $0x8d4] ss:$24 sps:$4 sm:$0xff]  }
  0x9c   :  { %1971 = vmatprep.subr.bf16.mxu0 %v2827_v3  ;;  %v2914_v3 = vld [vmem:[#allocation5 + $0x2a8] ss:$24 sps:$4 sm:$0xff]  }
  0x9d   :  { %1918 = vmatmul.mubr.bf16.vlgmr.msra.gmra.mrb[0].mxu1 %v3403_v7 }
  0x9e   :  { %1961 = vmatmul.mubr.bf16.vlgmr.msra.gmra.mrb[0].mxu0 %v3405_v8  ;;  %2015 = vmatpush1.bf16.msra.mxu1 %v2828_v6  ;;  %v2917_v6 = vld [vmem:[#allocation5 + $0x8d0] ss:$24 sps:$4 sm:$0xff]  }
  0x9f   :  { %1972 = vmatpush1.bf16.msra.mxu0 %v2825_v5  ;;  %2016 = vmatprep.subr.bf16.mxu1 %v2838_v10  ;;  %v2922_v5 = vld [vmem:[#allocation5 + $0x2dc] ss:$24 sps:$4 sm:$0xff]   ;;  %v2928_v10 = vld [vmem:[#allocation5 + $0x30c] ss:$24 sps:$4 sm:$0xff]  }
  0xa0   :  { %1973 = vmatprep.subr.bf16.mxu0 %v2835_v9  ;;  %2046 = vmatprep.mubr.bf16.mxu1 %v3397_v49  ;;  %v2920_v9 = vld [vmem:[#allocation5 + $0x2d8] ss:$24 sps:$4 sm:$0xff]  }
  0xa1   :  { %2003 = vmatprep.mubr.bf16.mxu0 %v3410_v35 }
  0xa2   :  { %2017 = vmatpush1.bf16.msra.mxu1 %v2836_v12  ;;  %v3413_v12 = vld [vmem:[#allocation3 + $0x10] ss:$24 sps:$4 sm:$0xff]  }
  0xa3   :  { %1974 = vmatpush1.bf16.msra.mxu0 %v2833_v11  ;;  %2018 = vmatprep.subr.bf16.mxu1 %v2844_v14  ;;  %v2931_v11 = vld [vmem:[#allocation5 + $0x14] ss:$24 sps:$4 sm:$0xff]   ;;  %v2929_v14 = vld [vmem:[#allocation5 + $0x10] ss:$24 sps:$4 sm:$0xff]  }
  0xa4   :  { %1975 = vmatprep.subr.bf16.mxu0 %v2841_v13  ;;  %v2926_v13 = vld [vmem:[#allocation5 + $0x308] ss:$24 sps:$4 sm:$0xff]  }
  0xa6   :  { %2019 = vmatpush1.bf16.msra.mxu1 %v2842_v16  ;;  %v2937_v16 = vld [vmem:[#allocation5 + $0x44] ss:$24 sps:$4 sm:$0xff]  }
  0xa7   :  { %1976 = vmatpush1.bf16.msra.mxu0 %v2839_v15  ;;  %2020 = vmatprep.subr.bf16.mxu1 %v2850_v18  ;;  %v2934_v15 = vld [vmem:[#allocation5 + $0x33c] ss:$24 sps:$4 sm:$0xff]   ;;  %v2935_v18 = vld [vmem:[#allocation5 + $0x40] ss:$24 sps:$4 sm:$0xff]  }
  0xa8   :  { %1977 = vmatprep.subr.bf16.mxu0 %v2847_v17  ;;  %v2932_v17 = vld [vmem:[#allocation5 + $0x338] ss:$24 sps:$4 sm:$0xff]  }
  0xaa   :  { %2021 = vmatpush1.bf16.msra.mxu1 %v2848_v20  ;;  %v2943_v20 = vld [vmem:[#allocation5 + $0x74] ss:$24 sps:$4 sm:$0xff]  }
  0xab   :  { %1978 = vmatpush1.bf16.msra.mxu0 %v2845_v19  ;;  %2022 = vmatprep.subr.bf16.mxu1 %v2856_v22  ;;  %v2940_v19 = vld [vmem:[#allocation5 + $0x36c] ss:$24 sps:$4 sm:$0xff]   ;;  %v2941_v22 = vld [vmem:[#allocation5 + $0x70] ss:$24 sps:$4 sm:$0xff]  }
  0xac   :  { %1979 = vmatprep.subr.bf16.mxu0 %v2853_v21  ;;  %v2938_v21 = vld [vmem:[#allocation5 + $0x368] ss:$24 sps:$4 sm:$0xff]  }
  0xae   :  { %2023 = vmatpush1.bf16.msra.mxu1 %v2854_v24  ;;  %v2949_v24 = vld [vmem:[#allocation5 + $0xa4] ss:$24 sps:$4 sm:$0xff]  }
  0xaf   :  { %1980 = vmatpush1.bf16.msra.mxu0 %v2851_v23  ;;  %2024 = vmatprep.subr.bf16.mxu1 %v2862_v26  ;;  %v2946_v23 = vld [vmem:[#allocation5 + $0x39c] ss:$24 sps:$4 sm:$0xff]   ;;  %v2947_v26 = vld [vmem:[#allocation5 + $0xa0] ss:$24 sps:$4 sm:$0xff]  }
  0xb0   :  { %1981 = vmatprep.subr.bf16.mxu0 %v2859_v25  ;;  %v2944_v25 = vld [vmem:[#allocation5 + $0x398] ss:$24 sps:$4 sm:$0xff]  }
  0xb2   :  { %2025 = vmatpush1.bf16.msra.mxu1 %v2860_v28  ;;  %v2955_v28 = vld [vmem:[#allocation5 + $0xd4] ss:$24 sps:$4 sm:$0xff]  }
  0xb3   :  { %1982 = vmatpush1.bf16.msra.mxu0 %v2857_v27  ;;  %2026 = vmatprep.subr.bf16.mxu1 %v2868_v30  ;;  %v2952_v27 = vld [vmem:[#allocation5 + $0x3cc] ss:$24 sps:$4 sm:$0xff]  }
  0xb4   :  { %1983 = vmatprep.subr.bf16.mxu0 %v2865_v29  ;;  %v2950_v29 = vld [vmem:[#allocation5 + $0x3c8] ss:$24 sps:$4 sm:$0xff]   ;;  %v2961_v30 = vld [vmem:[#allocation5 + $0x104] ss:$24 sps:$4 sm:$0xff]  }
  0xb6   :  { %2027 = vmatpush1.bf16.msra.mxu1 %v2866_v32  ;;  %v2959_v32 = vld [vmem:[#allocation5 + $0x100] ss:$24 sps:$4 sm:$0xff]  }
  0xb7   :  { %1984 = vmatpush1.bf16.msra.mxu0 %v2863_v31  ;;  %2028 = vmatprep.subr.bf16.mxu1 %v2874_v34  ;;  %v2956_v31 = vld [vmem:[#allocation5 + $0x3f8] ss:$24 sps:$4 sm:$0xff]   ;;  %v2967_v34 = vld [vmem:[#allocation5 + $0x134] ss:$24 sps:$4 sm:$0xff]  }
  0xb8   :  { %1985 = vmatprep.subr.bf16.mxu0 %v2871_v33  ;;  %v2964_v33 = vld [vmem:[#allocation5 + $0x42c] ss:$24 sps:$4 sm:$0xff]  }
  0xba   :  { %2029 = vmatpush1.bf16.msra.mxu1 %v2872_v37  ;;  %v2965_v37 = vld [vmem:[#allocation5 + $0x130] ss:$24 sps:$4 sm:$0xff]  }
  0xbb   :  { %1986 = vmatpush1.bf16.msra.mxu0 %v2869_v36  ;;  %2030 = vmatprep.subr.bf16.mxu1 %v2880_v39  ;;  %v2962_v36 = vld [vmem:[#allocation5 + $0x428] ss:$24 sps:$4 sm:$0xff]   ;;  %v2973_v39 = vld [vmem:[#allocation5 + $0x164] ss:$24 sps:$4 sm:$0xff]  }
  0xbc   :  { %1987 = vmatprep.subr.bf16.mxu0 %v2877_v38  ;;  %v2970_v38 = vld [vmem:[#allocation5 + $0x45c] ss:$24 sps:$4 sm:$0xff]  }
  0xbe   :  { %2031 = vmatpush1.bf16.msra.mxu1 %v2878_v41  ;;  %v2971_v41 = vld [vmem:[#allocation5 + $0x160] ss:$24 sps:$4 sm:$0xff]  }
  0xbf   :  { %1988 = vmatpush1.bf16.msra.mxu0 %v2875_v40  ;;  %2032 = vmatprep.subr.bf16.mxu1 %v2886_v43  ;;  %v2968_v40 = vld [vmem:[#allocation5 + $0x458] ss:$24 sps:$4 sm:$0xff]   ;;  %v2979_v43 = vld [vmem:[#allocation5 + $0x194] ss:$24 sps:$4 sm:$0xff]  }
  0xc0   :  { %1989 = vmatprep.subr.bf16.mxu0 %v2883_v42  ;;  %v2976_v42 = vld [vmem:[#allocation5 + $0x48c] ss:$24 sps:$4 sm:$0xff]  }
  0xc2   :  { %2033 = vmatpush1.bf16.msra.mxu1 %v2884_v45  ;;  %v2977_v45 = vld [vmem:[#allocation5 + $0x190] ss:$24 sps:$4 sm:$0xff]  }
  0xc3   :  { %1990 = vmatpush1.bf16.msra.mxu0 %v2881_v44  ;;  %2034 = vmatprep.subr.bf16.mxu1 %v2892_v47  ;;  %v2974_v44 = vld [vmem:[#allocation5 + $0x488] ss:$24 sps:$4 sm:$0xff]   ;;  %v2985_v47 = vld [vmem:[#allocation5 + $0x1c4] ss:$24 sps:$4 sm:$0xff]  }
  0xc4   :  { %1991 = vmatprep.subr.bf16.mxu0 %v2889_v46  ;;  %v2982_v46 = vld [vmem:[#allocation5 + $0x4bc] ss:$24 sps:$4 sm:$0xff]  }
  0xc6   :  { %2035 = vmatpush1.bf16.msra.mxu1 %v2890_v51  ;;  %v2983_v51 = vld [vmem:[#allocation5 + $0x1c0] ss:$24 sps:$4 sm:$0xff]  }
  0xc7   :  { %1992 = vmatpush1.bf16.msra.mxu0 %v2887_v48  ;;  %2036 = vmatprep.subr.bf16.mxu1 %v2898_v53  ;;  %v2980_v48 = vld [vmem:[#allocation5 + $0x4b8] ss:$24 sps:$4 sm:$0xff]   ;;  %v2991_v53 = vld [vmem:[#allocation5 + $0x1f4] ss:$24 sps:$4 sm:$0xff]  }
  0xc8   :  { %1993 = vmatprep.subr.bf16.mxu0 %v2895_v52  ;;  %v2988_v52 = vld [vmem:[#allocation5 + $0x4ec] ss:$24 sps:$4 sm:$0xff]  }
  0xca   :  { %2037 = vmatpush1.bf16.msra.mxu1 %v2896_v55  ;;  %v2989_v55 = vld [vmem:[#allocation5 + $0x1f0] ss:$24 sps:$4 sm:$0xff]  }
  0xcb   :  { %1994 = vmatpush1.bf16.msra.mxu0 %v2893_v54  ;;  %2038 = vmatprep.subr.bf16.mxu1 %v2904_v57  ;;  %v2986_v54 = vld [vmem:[#allocation5 + $0x4e8] ss:$24 sps:$4 sm:$0xff]   ;;  %v2997_v57 = vld [vmem:[#allocation5 + $0x224] ss:$24 sps:$4 sm:$0xff]  }
  0xcc   :  { %1995 = vmatprep.subr.bf16.mxu0 %v2901_v56  ;;  %v2994_v56 = vld [vmem:[#allocation5 + $0x51c] ss:$24 sps:$4 sm:$0xff]  }
  0xce   :  { %2039 = vmatpush1.bf16.msra.mxu1 %v2902_v59  ;;  %v2995_v59 = vld [vmem:[#allocation5 + $0x220] ss:$24 sps:$4 sm:$0xff]  }
  0xcf   :  { %1996 = vmatpush1.bf16.msra.mxu0 %v2899_v58  ;;  %2040 = vmatprep.subr.bf16.mxu1 %v2910_v61  ;;  %v2992_v58 = vld [vmem:[#allocation5 + $0x518] ss:$24 sps:$4 sm:$0xff]   ;;  %v3003_v61 = vld [vmem:[#allocation5 + $0x254] ss:$24 sps:$4 sm:$0xff]  }
  0xd0   :  { %1997 = vmatprep.subr.bf16.mxu0 %v2907_v60  ;;  %v3000_v60 = vld [vmem:[#allocation5 + $0x54c] ss:$24 sps:$4 sm:$0xff]  }
  0xd2   :  { %2041 = vmatpush1.bf16.msra.mxu1 %v2908_v63  ;;  %v3001_v63 = vld [vmem:[#allocation5 + $0x250] ss:$24 sps:$4 sm:$0xff]  }
  0xd3   :  { %1998 = vmatpush1.bf16.msra.mxu0 %v2905_v62  ;;  %2042 = vmatprep.subr.bf16.mxu1 %v2916_v1  ;;  %v2998_v62 = vld [vmem:[#allocation5 + $0x548] ss:$24 sps:$4 sm:$0xff]   ;;  %v3009_v1 = vld [vmem:[#allocation5 + $0x284] ss:$24 sps:$4 sm:$0xff]  }
  0xd4   :  { %1999 = vmatprep.subr.bf16.mxu0 %v2913_v0  ;;  %v3006_v0 = vld [vmem:[#allocation5 + $0x57c] ss:$24 sps:$4 sm:$0xff]  }
  0xd6   :  { %2043 = vmatpush1.bf16.msra.mxu1 %v2914_v3  ;;  %v3007_v3 = vld [vmem:[#allocation5 + $0x280] ss:$24 sps:$4 sm:$0xff]  }
  0xd7   :  { %2000 = vmatpush1.bf16.msra.mxu0 %v2911_v2  ;;  %2044 = vmatprep.subr.bf16.mxu1 %v2922_v5  ;;  %v3004_v2 = vld [vmem:[#allocation5 + $0x578] ss:$24 sps:$4 sm:$0xff]   ;;  %v3015_v5 = vld [vmem:[#allocation5 + $0x2b4] ss:$24 sps:$4 sm:$0xff]  }
  0xd8   :  { %2001 = vmatprep.subr.bf16.mxu0 %v2919_v4  ;;  %v3012_v4 = vld [vmem:[#allocation5 + $0x5ac] ss:$24 sps:$4 sm:$0xff]  }
  0xda   :  { %2045 = vmatpush1.bf16.msra.mxu1 %v2920_v9  ;;  %v3013_v9 = vld [vmem:[#allocation5 + $0x2b0] ss:$24 sps:$4 sm:$0xff]  }
  0xdb   :  { %2002 = vmatpush1.bf16.msra.mxu0 %v2917_v6  ;;  %2057 = vmatprep.subr.bf16.mxu1 %v2928_v10  ;;  %v3010_v6 = vld [vmem:[#allocation5 + $0x5a8] ss:$24 sps:$4 sm:$0xff]   ;;  %v3018_v10 = vld [vmem:[#allocation5 + $0x5dc] ss:$24 sps:$4 sm:$0xff]  }
  0xdc   :  { %2143 = vmatprep.subr.bf16.mxu0 %v2931_v11  ;;  %v3021_v11 = vld [vmem:[#allocation5 + $0x2e4] ss:$24 sps:$4 sm:$0xff]  }
  0xdd   :  { %2047 = vmatmul.mubr.bf16.vlgmr.msra.gmra.mrb[4].mxu1 %v3403_v7 }
  0xde   :  { %2004 = vmatmul.mubr.bf16.vlgmr.msra.gmra.mrb[0].mxu0 %v3413_v12  ;;  %2058 = vmatpush1.bf16.msra.mxu1 %v2926_v13  ;;  %v3016_v13 = vld [vmem:[#allocation5 + $0x5d8] ss:$24 sps:$4 sm:$0xff]  }
  0xdf   :  { %2144 = vmatpush1.bf16.msra.mxu0 %v2929_v14  ;;  %2059 = vmatprep.subr.bf16.mxu1 %v2934_v15  ;;  %v3019_v14 = vld [vmem:[#allocation5 + $0x2e0] ss:$24 sps:$4 sm:$0xff]   ;;  %v3024_v15 = vld [vmem:[#allocation5 + $0x60c] ss:$24 sps:$4 sm:$0xff]  }
  0xe0   :  { %2145 = vmatprep.subr.bf16.mxu0 %v2937_v16  ;;  %2089 = vmatprep.mubr.bf16.mxu1 %v3399_v50  ;;  %v2953_v50 = vld [vmem:[#allocation5 + $0xd0] ss:$24 sps:$4 sm:$0xff]   ;;  %v3027_v16 = vld [vmem:[#allocation5 + $0x314] ss:$24 sps:$4 sm:$0xff]  }
  0xe1   :  { %2175 = vmatprep.mubr.bf16.mxu0 %v3397_v49  ;;  %v2958_v49 = vld [vmem:[#allocation5 + $0x3fc] ss:$24 sps:$4 sm:$0xff]  }
  0xe2   :  { %2060 = vmatpush1.bf16.msra.mxu1 %v2932_v17  ;;  %v3022_v17 = vld [vmem:[#allocation5 + $0x608] ss:$24 sps:$4 sm:$0xff]  }
  0xe3   :  { %2146 = vmatpush1.bf16.msra.mxu0 %v2935_v18  ;;  %2061 = vmatprep.subr.bf16.mxu1 %v2940_v19  ;;  %v3025_v18 = vld [vmem:[#allocation5 + $0x310] ss:$24 sps:$4 sm:$0xff]   ;;  %v3030_v19 = vld [vmem:[#allocation5 + $0x63c] ss:$24 sps:$4 sm:$0xff]  }
  0xe4   :  { %2147 = vmatprep.subr.bf16.mxu0 %v2943_v20  ;;  %v3033_v20 = vld [vmem:[#allocation5 + $0x344] ss:$24 sps:$4 sm:$0xff]  }
  0xe6   :  { %2062 = vmatpush1.bf16.msra.mxu1 %v2938_v21  ;;  %v3028_v21 = vld [vmem:[#allocation5 + $0x638] ss:$24 sps:$4 sm:$0xff]  }
  0xe7   :  { %2148 = vmatpush1.bf16.msra.mxu0 %v2941_v22  ;;  %2063 = vmatprep.subr.bf16.mxu1 %v2946_v23  ;;  %v3031_v22 = vld [vmem:[#allocation5 + $0x340] ss:$24 sps:$4 sm:$0xff]   ;;  %v3036_v23 = vld [vmem:[#allocation5 + $0x66c] ss:$24 sps:$4 sm:$0xff]  }
  0xe8   :  { %2149 = vmatprep.subr.bf16.mxu0 %v2949_v24  ;;  %v3039_v24 = vld [vmem:[#allocation5 + $0x374] ss:$24 sps:$4 sm:$0xff]  }
  0xea   :  { %2064 = vmatpush1.bf16.msra.mxu1 %v2944_v25  ;;  %v3166_v25 = vld [vmem:[#allocation3 + $0xc] ss:$24 sps:$4 sm:$0xff]  }
  0xeb   :  { %2150 = vmatpush1.bf16.msra.mxu0 %v2947_v26  ;;  %2065 = vmatprep.subr.bf16.mxu1 %v2952_v27  ;;  %v3034_v26 = vld [vmem:[#allocation5 + $0x668] ss:$24 sps:$4 sm:$0xff]  }
  0xec   :  { %2151 = vmatprep.subr.bf16.mxu0 %v2955_v28  ;;  %v3037_v27 = vld [vmem:[#allocation5 + $0x370] ss:$24 sps:$4 sm:$0xff]  }
  0xed   :  { %v3040_v28 = vld [vmem:[#allocation5 + $0x698] ss:$24 sps:$4 sm:$0xff]  }
  0xee   :  { %2066 = vmatpush1.bf16.msra.mxu1 %v2950_v29  ;;  %v3043_v29 = vld [vmem:[#allocation5 + $0x3a0] ss:$24 sps:$4 sm:$0xff]  }
  0xef   :  { %2152 = vmatpush1.bf16.msra.mxu0 %v2953_v50  ;;  %2067 = vmatprep.subr.bf16.mxu1 %v2958_v49  ;;  %v3048_v50 = vld [vmem:[#allocation5 + $0x6cc] ss:$24 sps:$4 sm:$0xff]  }
  0xf0   :  { %2153 = vmatprep.subr.bf16.mxu0 %v2961_v30  ;;  %v3051_v49 = vld [vmem:[#allocation5 + $0x3d4] ss:$24 sps:$4 sm:$0xff]   ;;  %v3046_v30 = vld [vmem:[#allocation5 + $0x6c8] ss:$24 sps:$4 sm:$0xff]  }
  0xf2   :  { %2068 = vmatpush1.bf16.msra.mxu1 %v2956_v31  ;;  %v3049_v31 = vld [vmem:[#allocation5 + $0x3d0] ss:$24 sps:$4 sm:$0xff]  }
  0xf3   :  { %2154 = vmatpush1.bf16.msra.mxu0 %v2959_v32  ;;  %2069 = vmatprep.subr.bf16.mxu1 %v2964_v33  ;;  %v3054_v32 = vld [vmem:[#allocation5 + $0x6fc] ss:$24 sps:$4 sm:$0xff]  }
  0xf4   :  { %2155 = vmatprep.subr.bf16.mxu0 %v2967_v34  ;;  %v3057_v33 = vld [vmem:[#allocation5 + $0x404] ss:$24 sps:$4 sm:$0xff]   ;;  %v3052_v34 = vld [vmem:[#allocation5 + $0x6f8] ss:$24 sps:$4 sm:$0xff]  }
  0xf6   :  { %2070 = vmatpush1.bf16.msra.mxu1 %v2962_v36  ;;  %v3055_v36 = vld [vmem:[#allocation5 + $0x400] ss:$24 sps:$4 sm:$0xff]  }
  0xf7   :  { %2156 = vmatpush1.bf16.msra.mxu0 %v2965_v37  ;;  %2071 = vmatprep.subr.bf16.mxu1 %v2970_v38  ;;  %v3060_v37 = vld [vmem:[#allocation5 + $0x72c] ss:$24 sps:$4 sm:$0xff]  }
  0xf8   :  { %2157 = vmatprep.subr.bf16.mxu0 %v2973_v39  ;;  %v3063_v38 = vld [vmem:[#allocation5 + $0x434] ss:$24 sps:$4 sm:$0xff]   ;;  %v3058_v39 = vld [vmem:[#allocation5 + $0x728] ss:$24 sps:$4 sm:$0xff]  }
  0xfa   :  { %2072 = vmatpush1.bf16.msra.mxu1 %v2968_v40  ;;  %v3061_v40 = vld [vmem:[#allocation5 + $0x430] ss:$24 sps:$4 sm:$0xff]  }
  0xfb   :  { %2158 = vmatpush1.bf16.msra.mxu0 %v2971_v41  ;;  %2073 = vmatprep.subr.bf16.mxu1 %v2976_v42  ;;  %v3066_v41 = vld [vmem:[#allocation5 + $0x75c] ss:$24 sps:$4 sm:$0xff]  }
  0xfc   :  { %2159 = vmatprep.subr.bf16.mxu0 %v2979_v43  ;;  %v3069_v42 = vld [vmem:[#allocation5 + $0x464] ss:$24 sps:$4 sm:$0xff]   ;;  %v3064_v43 = vld [vmem:[#allocation5 + $0x758] ss:$24 sps:$4 sm:$0xff]  }
  0xfe   :  { %2074 = vmatpush1.bf16.msra.mxu1 %v2974_v44  ;;  %v3067_v44 = vld [vmem:[#allocation5 + $0x460] ss:$24 sps:$4 sm:$0xff]  }
  0xff   :  { %2160 = vmatpush1.bf16.msra.mxu0 %v2977_v45  ;;  %2075 = vmatprep.subr.bf16.mxu1 %v2982_v46  ;;  %v3072_v45 = vld [vmem:[#allocation5 + $0x78c] ss:$24 sps:$4 sm:$0xff]  }
 0x100   :  { %2161 = vmatprep.subr.bf16.mxu0 %v2985_v47  ;;  %v3075_v46 = vld [vmem:[#allocation5 + $0x494] ss:$24 sps:$4 sm:$0xff]   ;;  %v3070_v47 = vld [vmem:[#allocation5 + $0x788] ss:$24 sps:$4 sm:$0xff]  }
 0x102   :  { %2076 = vmatpush1.bf16.msra.mxu1 %v2980_v48  ;;  %v3073_v48 = vld [vmem:[#allocation5 + $0x490] ss:$24 sps:$4 sm:$0xff]  }
 0x103   :  { %2162 = vmatpush1.bf16.msra.mxu0 %v2983_v51  ;;  %2077 = vmatprep.subr.bf16.mxu1 %v2988_v52  ;;  %v3078_v51 = vld [vmem:[#allocation5 + $0x7bc] ss:$24 sps:$4 sm:$0xff]  }
 0x104   :  { %2163 = vmatprep.subr.bf16.mxu0 %v2991_v53  ;;  %v3081_v52 = vld [vmem:[#allocation5 + $0x4c4] ss:$24 sps:$4 sm:$0xff]   ;;  %v3076_v53 = vld [vmem:[#allocation5 + $0x7b8] ss:$24 sps:$4 sm:$0xff]  }
 0x106   :  { %2078 = vmatpush1.bf16.msra.mxu1 %v2986_v54  ;;  %v3079_v54 = vld [vmem:[#allocation5 + $0x4c0] ss:$24 sps:$4 sm:$0xff]  }
 0x107   :  { %2164 = vmatpush1.bf16.msra.mxu0 %v2989_v55  ;;  %2079 = vmatprep.subr.bf16.mxu1 %v2994_v56  ;;  %v3084_v55 = vld [vmem:[#allocation5 + $0x7ec] ss:$24 sps:$4 sm:$0xff]  }
 0x108   :  { %2165 = vmatprep.subr.bf16.mxu0 %v2997_v57  ;;  %v3087_v56 = vld [vmem:[#allocation5 + $0x4f4] ss:$24 sps:$4 sm:$0xff]   ;;  %v3082_v57 = vld [vmem:[#allocation5 + $0x7e8] ss:$24 sps:$4 sm:$0xff]  }
 0x10a   :  { %2080 = vmatpush1.bf16.msra.mxu1 %v2992_v58  ;;  %v3085_v58 = vld [vmem:[#allocation5 + $0x4f0] ss:$24 sps:$4 sm:$0xff]  }
 0x10b   :  { %2166 = vmatpush1.bf16.msra.mxu0 %v2995_v59  ;;  %2081 = vmatprep.subr.bf16.mxu1 %v3000_v60  ;;  %v3090_v59 = vld [vmem:[#allocation5 + $0x81c] ss:$24 sps:$4 sm:$0xff]  }
 0x10c   :  { %2167 = vmatprep.subr.bf16.mxu0 %v3003_v61  ;;  %v3093_v60 = vld [vmem:[#allocation5 + $0x524] ss:$24 sps:$4 sm:$0xff]   ;;  %v3088_v61 = vld [vmem:[#allocation5 + $0x818] ss:$24 sps:$4 sm:$0xff]  }
 0x10e   :  { %2082 = vmatpush1.bf16.msra.mxu1 %v2998_v62  ;;  %v3091_v62 = vld [vmem:[#allocation5 + $0x520] ss:$24 sps:$4 sm:$0xff]  }
 0x10f   :  { %2168 = vmatpush1.bf16.msra.mxu0 %v3001_v63  ;;  %2083 = vmatprep.subr.bf16.mxu1 %v3006_v0  ;;  %v3096_v63 = vld [vmem:[#allocation5 + $0x84c] ss:$24 sps:$4 sm:$0xff]  }
 0x110   :  { %2169 = vmatprep.subr.bf16.mxu0 %v3009_v1  ;;  %v3099_v0 = vld [vmem:[#allocation5 + $0x554] ss:$24 sps:$4 sm:$0xff]   ;;  %v3094_v1 = vld [vmem:[#allocation5 + $0x848] ss:$24 sps:$4 sm:$0xff]  }
 0x112   :  { %2084 = vmatpush1.bf16.msra.mxu1 %v3004_v2  ;;  %v3097_v2 = vld [vmem:[#allocation5 + $0x550] ss:$24 sps:$4 sm:$0xff]  }
 0x113   :  { %2170 = vmatpush1.bf16.msra.mxu0 %v3007_v3  ;;  %2085 = vmatprep.subr.bf16.mxu1 %v3012_v4  ;;  %v3102_v3 = vld [vmem:[#allocation5 + $0x87c] ss:$24 sps:$4 sm:$0xff]  }
 0x114   :  { %2171 = vmatprep.subr.bf16.mxu0 %v3015_v5  ;;  %v3105_v4 = vld [vmem:[#allocation5 + $0x584] ss:$24 sps:$4 sm:$0xff]   ;;  %v3100_v5 = vld [vmem:[#allocation5 + $0x878] ss:$24 sps:$4 sm:$0xff]  }
 0x116   :  { %2086 = vmatpush1.bf16.msra.mxu1 %v3010_v6  ;;  %v3103_v6 = vld [vmem:[#allocation5 + $0x580] ss:$24 sps:$4 sm:$0xff]  }
 0x117   :  { %2172 = vmatpush1.bf16.msra.mxu0 %v3013_v9  ;;  %2087 = vmatprep.subr.bf16.mxu1 %v3018_v10  ;;  %v3108_v9 = vld [vmem:[#allocation5 + $0x8ac] ss:$24 sps:$4 sm:$0xff]  }
 0x118   :  { %2173 = vmatprep.subr.bf16.mxu0 %v3021_v11  ;;  %v3111_v10 = vld [vmem:[#allocation5 + $0x5b4] ss:$24 sps:$4 sm:$0xff]   ;;  %v3106_v11 = vld [vmem:[#allocation5 + $0x8a8] ss:$24 sps:$4 sm:$0xff]  }
 0x11a   :  { %2088 = vmatpush1.bf16.msra.mxu1 %v3016_v13  ;;  %v3109_v13 = vld [vmem:[#allocation5 + $0x5b0] ss:$24 sps:$4 sm:$0xff]  }
 0x11b   :  { %2174 = vmatpush1.bf16.msra.mxu0 %v3019_v14  ;;  %2100 = vmatprep.subr.bf16.mxu1 %v3024_v15  ;;  %v3114_v14 = vld [vmem:[#allocation5 + $0x8dc] ss:$24 sps:$4 sm:$0xff]  }
 0x11c   :  { %2186 = vmatprep.subr.bf16.mxu0 %v3027_v16  ;;  %v3117_v15 = vld [vmem:[#allocation5 + $0x5e4] ss:$24 sps:$4 sm:$0xff]   ;;  %v3112_v16 = vld [vmem:[#allocation5 + $0x8d8] ss:$24 sps:$4 sm:$0xff]  }
 0x11d   :  { %2090 = vmatmul.mubr.bf16.vlgmr.msra.gmra.mrb[4].mxu1 %v3405_v8  ;;  %v3042_v8 = vld [vmem:[#allocation5 + $0x69c] ss:$24 sps:$4 sm:$0xff]  }
 0x11e   :  { %2176 = vmatmul.mubr.bf16.vlgmr.msra.gmra.mrb[4].mxu0 %v3403_v7  ;;  %2101 = vmatpush1.bf16.msra.mxu1 %v3022_v17  ;;  %v3045_v7 = vld [vmem:[#allocation5 + $0x3a4] ss:$24 sps:$4 sm:$0xff]   ;;  %v3115_v17 = vld [vmem:[#allocation5 + $0x5e0] ss:$24 sps:$4 sm:$0xff]  }
 0x11f   :  { %2187 = vmatpush1.bf16.msra.mxu0 %v3025_v18  ;;  %2102 = vmatprep.subr.bf16.mxu1 %v3030_v19  ;;  %v3120_v18 = vld [vmem:[#allocation5 + $0x614] ss:$24 sps:$4 sm:$0xff]   ;;  %v3118_v19 = vld [vmem:[#allocation5 + $0x610] ss:$24 sps:$4 sm:$0xff]  }
 0x120   :  { %2188 = vmatprep.subr.bf16.mxu0 %v3033_v20  ;;  %2132 = vmatprep.mubr.bf16.mxu1 %v3410_v35  ;;  %v3123_v20 = vld [vmem:[#allocation5 + $0x644] ss:$24 sps:$4 sm:$0xff]  }
 0x121   :  { %2218 = vmatprep.mubr.bf16.mxu0 %v3166_v25  ;;  %v3129_v25 = vld [vmem:[#allocation5 + $0x6a4] ss:$24 sps:$4 sm:$0xff]  }
 0x122   :  { %2103 = vmatpush1.bf16.msra.mxu1 %v3028_v21  ;;  %v3167_v21 = vld [vmem:[#allocation3 + $0x8] ss:$24 sps:$4 sm:$0xff]  }
 0x123   :  { %2189 = vmatpush1.bf16.msra.mxu0 %v3031_v22  ;;  %2104 = vmatprep.subr.bf16.mxu1 %v3036_v23  ;;  %v3121_v22 = vld [vmem:[#allocation5 + $0x640] ss:$24 sps:$4 sm:$0xff]   ;;  %v3126_v23 = vld [vmem:[#allocation5 + $0x674] ss:$24 sps:$4 sm:$0xff]  }
 0x124   :  { %2190 = vmatprep.subr.bf16.mxu0 %v3039_v24  ;;  %v3124_v24 = vld [vmem:[#allocation5 + $0x670] ss:$24 sps:$4 sm:$0xff]  }
 0x126   :  { %2105 = vmatpush1.bf16.msra.mxu1 %v3034_v26  ;;  %v3127_v26 = vld [vmem:[#allocation5 + $0x6a0] ss:$24 sps:$4 sm:$0xff]  }
 0x127   :  { %2191 = vmatpush1.bf16.msra.mxu0 %v3037_v27  ;;  %2106 = vmatprep.subr.bf16.mxu1 %v3042_v8  ;;  %v3132_v27 = vld [vmem:[#allocation5 + $0x6d4] ss:$24 sps:$4 sm:$0xff]   ;;  %v3130_v8 = vld [vmem:[#allocation5 + $0x6d0] ss:$24 sps:$4 sm:$0xff]  }
 0x128   :  { %2192 = vmatprep.subr.bf16.mxu0 %v3045_v7  ;;  %v3135_v7 = vld [vmem:[#allocation5 + $0x704] ss:$24 sps:$4 sm:$0xff]  }
 0x12a   :  { %2107 = vmatpush1.bf16.msra.mxu1 %v3040_v28  ;;  %v3133_v28 = vld [vmem:[#allocation5 + $0x700] ss:$24 sps:$4 sm:$0xff]  }
 0x12b   :  { %2193 = vmatpush1.bf16.msra.mxu0 %v3043_v29  ;;  %2108 = vmatprep.subr.bf16.mxu1 %v3048_v50  ;;  %v3138_v29 = vld [vmem:[#allocation5 + $0x734] ss:$24 sps:$4 sm:$0xff]  }
 0x12c   :  { %2194 = vmatprep.subr.bf16.mxu0 %v3051_v49  ;;  %v3136_v49 = vld [vmem:[#allocation5 + $0x730] ss:$24 sps:$4 sm:$0xff]  }
 0x12e   :  { %2109 = vmatpush1.bf16.msra.mxu1 %v3046_v30 }
 0x12f   :  { %2195 = vmatpush1.bf16.msra.mxu0 %v3049_v31  ;;  %2110 = vmatprep.subr.bf16.mxu1 %v3054_v32  ;;  %v3141_v31 = vld [vmem:[#allocation5 + $0x764] ss:$24 sps:$4 sm:$0xff]  }
 0x130   :  { %2196 = vmatprep.subr.bf16.mxu0 %v3057_v33  ;;  %v3139_v33 = vld [vmem:[#allocation5 + $0x760] ss:$24 sps:$4 sm:$0xff]  }
 0x132   :  { %2111 = vmatpush1.bf16.msra.mxu1 %v3052_v34  ;;  %v3144_v34 = vld [vmem:[#allocation5 + $0x794] ss:$24 sps:$4 sm:$0xff]  }
 0x133   :  { %2197 = vmatpush1.bf16.msra.mxu0 %v3055_v36  ;;  %2112 = vmatprep.subr.bf16.mxu1 %v3060_v37  ;;  %v3142_v36 = vld [vmem:[#allocation5 + $0x790] ss:$24 sps:$4 sm:$0xff]   ;;  %v3147_v37 = vld [vmem:[#allocation5 + $0x7c4] ss:$24 sps:$4 sm:$0xff]  }
 0x134   :  { %2198 = vmatprep.subr.bf16.mxu0 %v3063_v38  ;;  %v3145_v38 = vld [vmem:[#allocation5 + $0x7c0] ss:$24 sps:$4 sm:$0xff]  }
 0x136   :  { %2113 = vmatpush1.bf16.msra.mxu1 %v3058_v39  ;;  %v3150_v39 = vld [vmem:[#allocation5 + $0x7f4] ss:$24 sps:$4 sm:$0xff]  }
 0x137   :  { %2199 = vmatpush1.bf16.msra.mxu0 %v3061_v40  ;;  %2114 = vmatprep.subr.bf16.mxu1 %v3066_v41  ;;  %v3148_v40 = vld [vmem:[#allocation5 + $0x7f0] ss:$24 sps:$4 sm:$0xff]   ;;  %v3153_v41 = vld [vmem:[#allocation5 + $0x824] ss:$24 sps:$4 sm:$0xff]  }
 0x138   :  { %2200 = vmatprep.subr.bf16.mxu0 %v3069_v42  ;;  %v3151_v42 = vld [vmem:[#allocation5 + $0x820] ss:$24 sps:$4 sm:$0xff]  }
 0x13a   :  { %2115 = vmatpush1.bf16.msra.mxu1 %v3064_v43  ;;  %v3156_v43 = vld [vmem:[#allocation5 + $0x854] ss:$24 sps:$4 sm:$0xff]  }
 0x13b   :  { %2201 = vmatpush1.bf16.msra.mxu0 %v3067_v44  ;;  %2116 = vmatprep.subr.bf16.mxu1 %v3072_v45  ;;  %v3154_v44 = vld [vmem:[#allocation5 + $0x850] ss:$24 sps:$4 sm:$0xff]   ;;  %v3159_v45 = vld [vmem:[#allocation5 + $0x884] ss:$24 sps:$4 sm:$0xff]  }
 0x13c   :  { %2202 = vmatprep.subr.bf16.mxu0 %v3075_v46  ;;  %v3157_v46 = vld [vmem:[#allocation5 + $0x880] ss:$24 sps:$4 sm:$0xff]  }
 0x13e   :  { %2117 = vmatpush1.bf16.msra.mxu1 %v3070_v47  ;;  %v3162_v47 = vld [vmem:[#allocation5 + $0x8b4] ss:$24 sps:$4 sm:$0xff]  }
 0x13f   :  { %2203 = vmatpush1.bf16.msra.mxu0 %v3073_v48  ;;  %2118 = vmatprep.subr.bf16.mxu1 %v3078_v51  ;;  %v3160_v48 = vld [vmem:[#allocation5 + $0x8b0] ss:$24 sps:$4 sm:$0xff]   ;;  %v3165_v51 = vld [vmem:[#allocation5 + $0x8e4] ss:$24 sps:$4 sm:$0xff]  }
 0x140   :  { %2204 = vmatprep.subr.bf16.mxu0 %v3081_v52  ;;  %v3163_v52 = vld [vmem:[#allocation5 + $0x8e0] ss:$24 sps:$4 sm:$0xff]  }
 0x142   :  { %2119 = vmatpush1.bf16.msra.mxu1 %v3076_v53  ;;  %v385_v53 = vlaneseq }
 0x143   :  { %2205 = vmatpush1.bf16.msra.mxu0 %v3079_v54  ;;  %2120 = vmatprep.subr.bf16.mxu1 %v3084_v55 }
 0x144   :  { %2206 = vmatprep.subr.bf16.mxu0 %v3087_v56  ;;  %v3425_v54 = vshrl.u32 %v385_v53, 7  ;;  %v3428_v56 = vld [vmem:[#allocation7] sm:$0x3f] }
 0x146   :  { %2121 = vmatpush1.bf16.msra.mxu1 %v3082_v57  ;;  %v387_v55 = vsub.s32 0, %v3425_v54  ;;  %v391_v57 = vsub.s32 1, %v3425_v54 }
 0x147   :  { %2207 = vmatpush1.bf16.msra.mxu0 %v3085_v58  ;;  %2122 = vmatprep.subr.bf16.mxu1 %v3090_v59 }
 0x148   :  { %2208 = vmatprep.subr.bf16.mxu0 %v3093_v60  ;;  %v388_v58 = vrot.slane %v3428_v56, %v387_v55  ;;  %v392_v59 = vrot.slane %v3428_v56, %v391_v57 }
 0x14a   :  { %2123 = vmatpush1.bf16.msra.mxu1 %v3088_v61  ;;  %v3433_v61 = vld [vmem:[#allocation8] sm:$0x3f] }
 0x14b   :  { %2209 = vmatpush1.bf16.msra.mxu0 %v3091_v62  ;;  %2124 = vmatprep.subr.bf16.mxu1 %v3096_v63 }
 0x14c   :  { %2210 = vmatprep.subr.bf16.mxu0 %v3099_v0 }
 0x14e   :  { %2125 = vmatpush1.bf16.msra.mxu1 %v3094_v1 }
 0x14f   :  { %2211 = vmatpush1.bf16.msra.mxu0 %v3097_v2  ;;  %2126 = vmatprep.subr.bf16.mxu1 %v3102_v3  ;;  %v2284_v3 = vld [vmem:[#allocation10] sm:$0xff] }
 0x150   :  { %2212 = vmatprep.subr.bf16.mxu0 %v3105_v4 }
 0x152   :  { %2127 = vmatpush1.bf16.msra.mxu1 %v3100_v5 }
 0x153   :  { %2213 = vmatpush1.bf16.msra.mxu0 %v3103_v6  ;;  %2128 = vmatprep.subr.bf16.mxu1 %v3108_v9  ;;  %v2313_v6 = vrot.slane %v3433_v61, %v387_v55 }
 0x154   :  { %2214 = vmatprep.subr.bf16.mxu0 %v3111_v10  ;;  %v2285_v10 = vld [vmem:[#allocation10 + $0x8] sm:$0xff] }
 0x156   :  { %2129 = vmatpush1.bf16.msra.mxu1 %v3106_v11 }
 0x157   :  { %2215 = vmatpush1.bf16.msra.mxu0 %v3109_v13  ;;  %2130 = vmatprep.subr.bf16.mxu1 %v3114_v14  ;;  %v2317_v14 = vrot.slane %v3433_v61, %v391_v57 }
 0x158   :  { %2216 = vmatprep.subr.bf16.mxu0 %v3117_v15 }
 0x15a   :  { %2131 = vmatpush1.bf16.msra.mxu1 %v3112_v16  ;;  %v2290_v16 = vld [vmem:[#allocation10 + $0x30] sm:$0xff] }
 0x15b   :  { %2217 = vmatpush1.bf16.msra.mxu0 %v3115_v17 }
 0x15c   :  { %2229 = vmatprep.subr.bf16.mxu0 %v3120_v18 }
 0x15d   :  { %2133 = vmatmul.mubr.bf16.vlgmr.msra.gmra.mrb[4].mxu1 %v3413_v12 }
 0x15e   :  { %2219 = vmatmul.mubr.bf16.vlgmr.msra.gmra.mrb[4].mxu0 %v3167_v21 }
 0x15f   :  { %2230 = vmatpush1.bf16.msra.mxu0 %v3118_v19  ;;  %2261 = vmatprep.mubr.bf16.mxu0 %v3410_v35 }
 0x160   :  { %2231 = vmatprep.subr.bf16.mxu0 %v3123_v20  ;;  %v2291_v20 = vld [vmem:[#allocation10 + $0x38] sm:$0xff] }
 0x163   :  { %2232 = vmatpush1.bf16.msra.mxu0 %v3121_v22 }
 0x164   :  { %2233 = vmatprep.subr.bf16.mxu0 %v3126_v23 }
 0x167   :  { %2234 = vmatpush1.bf16.msra.mxu0 %v3124_v24 }
 0x168   :  { %2235 = vmatprep.subr.bf16.mxu0 %v3129_v25 }
 0x16b   :  { %2236 = vmatpush1.bf16.msra.mxu0 %v3127_v26 }
 0x16c   :  { %2237 = vmatprep.subr.bf16.mxu0 %v3132_v27 }
 0x16f   :  { %2238 = vmatpush1.bf16.msra.mxu0 %v3130_v8 }
 0x170   :  { %2239 = vmatprep.subr.bf16.mxu0 %v3135_v7  ;;  %v1919_v50 = vpop.f32.mrb[0].mxu1 }
 0x171   :  { %v1921_v35 = vpop.f32.mrb[1].mxu1  ;;  %v1920_v60 = vadd.f32 %v1919_v50, %v388_v58  ;;  %v399_v50 = vsub.s32 3, %v3425_v54 }
 0x172   :  { %v1923_v30 = vpop.f32.mrb[2].mxu1  ;;  %v1922_v62 = vadd.f32 %v1921_v35, %v392_v59 }
 0x173   :  { %2240 = vmatpush1.bf16.msra.mxu0 %v3133_v28  ;;  %v1925_v32 = vpop.f32.mrb[3].mxu1  ;;  %v1924_v0 = vadd.f32 %v1923_v30, %v388_v58 }
 0x174   :  { %2241 = vmatprep.subr.bf16.mxu0 %v3138_v29  ;;  %v1926_v2 = vadd.f32 %v1925_v32, %v392_v59  ;;  %v395_v29 = vsub.s32 2, %v3425_v54 }
 0x176   :  { %v396_v35 = vrot.slane %v3428_v56, %v395_v29 }
 0x177   :  { %2242 = vmatpush1.bf16.msra.mxu0 %v3136_v49  ;;  %v400_v49 = vrot.slane %v3428_v56, %v399_v50 }
 0x178   :  { %2243 = vmatprep.subr.bf16.mxu0 %v3141_v31 }
 0x17b   :  { %2244 = vmatpush1.bf16.msra.mxu0 %v3139_v33  ;;  %v2286_v33 = vld [vmem:[#allocation10 + $0x10] sm:$0xff] }
 0x17c   :  { %2245 = vmatprep.subr.bf16.mxu0 %v3144_v34 }
 0x17f   :  { %2246 = vmatpush1.bf16.msra.mxu0 %v3142_v36 }
 0x180   :  { %2247 = vmatprep.subr.bf16.mxu0 %v3147_v37 }
 0x183   :  { %2248 = vmatpush1.bf16.msra.mxu0 %v3145_v38  ;;  %v2321_v38 = vrot.slane %v3433_v61, %v395_v29 }
 0x184   :  { %2249 = vmatprep.subr.bf16.mxu0 %v3150_v39  ;;  %v2287_v39 = vld [vmem:[#allocation10 + $0x18] sm:$0xff] }
 0x187   :  { %2250 = vmatpush1.bf16.msra.mxu0 %v3148_v40 }
 0x188   :  { %2251 = vmatprep.subr.bf16.mxu0 %v3153_v41 }
 0x18b   :  { %2252 = vmatpush1.bf16.msra.mxu0 %v3151_v42 }
 0x18c   :  { %2253 = vmatprep.subr.bf16.mxu0 %v3156_v43  ;;  %v2325_v43 = vrot.slane %v3433_v61, %v399_v50 }
 0x18f   :  { %2254 = vmatpush1.bf16.msra.mxu0 %v3154_v44  ;;  %v2292_v44 = vld [vmem:[#allocation10 + $0x40] sm:$0xff] }
 0x190   :  { %2255 = vmatprep.subr.bf16.mxu0 %v3159_v45 }
 0x193   :  { %2256 = vmatpush1.bf16.msra.mxu0 %v3157_v46 }
 0x194   :  { %2257 = vmatprep.subr.bf16.mxu0 %v3162_v47 }
 0x197   :  { %2258 = vmatpush1.bf16.msra.mxu0 %v3160_v48  ;;  %v2293_v48 = vld [vmem:[#allocation10 + $0x48] sm:$0xff] }
 0x198   :  { %2259 = vmatprep.subr.bf16.mxu0 %v3165_v51 }
 0x19b   :  { %2260 = vmatpush1.bf16.msra.mxu0 %v3163_v52 }
 0x19e   :  { %2262 = vmatmul.mubr.bf16.vlgmr.msra.gmra.mrb[4].mxu0 %v3413_v12 }
 0x1b1   :  { %v2005_v63 = vpop.f32.mrb[0].mxu0 }
 0x1b2   :  { %v2681_v12 = vadd.f32 %v2005_v63, %v1920_v60  ;;  %v2007_v1 = vpop.f32.mrb[1].mxu0 }
 0x1b3   :  { %v2683_v4 = vadd.f32 %v2007_v1, %v1922_v62  ;;  %v2009_v5 = vpop.f32.mrb[2].mxu0  ;;  %v403_v1 = vsub.s32 4, %v3425_v54 }
 0x1b4   :  { %v2272_v9 = vmax.f32 %v2681_v12, 0.0  ;;  %v2685_v11 = vadd.f32 %v2009_v5, %v1924_v0  ;;  %v2011_v13 = vpop.f32.mrb[3].mxu0 }
 0x1b5   :  { %v2273_v15 = vmax.f32 %v2683_v4, 0.0  ;;  %v2687_v17 = vadd.f32 %v2011_v13, %v1926_v2  ;;  %v407_v2 = vsub.s32 5, %v3425_v54 }
 0x1b6   :  { %v2296_v18 = vmul.f32 %v2284_v3, %v2272_v9  ;;  %v2278_v19 = vmax.f32 %v2685_v11, 0.0  ;;  %v404_v3 = vrot.slane %v3428_v56, %v403_v1 }
 0x1b7   :  { %v2297_v21 = vmul.f32 %v2285_v10, %v2273_v15  ;;  %v2279_v22 = vmax.f32 %v2687_v17, 0.0  ;;  %v408_v4 = vrot.slane %v3428_v56, %v407_v2  ;;  %v2288_v10 = vld [vmem:[#allocation10 + $0x20] sm:$0xff]  ;;  %v2329_v15 = vrot.slane %v3433_v61, %v403_v1  ;;  %v2295_v56 = vld [vmem:[#allocation10 + $0x58] sm:$0xff] }
 0x1b8   :  { %v2340_v23 = vmul.f32 %v2313_v6, %v2296_v18  ;;  %v2302_v24 = vmul.f32 %v2290_v16, %v2278_v19  ;;  %v2289_v16 = vld [vmem:[#allocation10 + $0x28] sm:$0xff]  ;;  %v2333_v54 = vrot.slane %v3433_v61, %v407_v2 }
 0x1b9   :  { %v2341_v25 = vmul.f32 %v2317_v14, %v2297_v21  ;;  %v2303_v26 = vmul.f32 %v2291_v20, %v2279_v22  ;;  %v2294_v20 = vld [vmem:[#allocation10 + $0x50] sm:$0xff] }
 0x1ba   :  { %v2346_v27 = vmul.f32 %v2313_v6, %v2302_v24 }
 0x1bb   :  { %v2352_v8 = vadd.f32 %v2341_v25, %v2340_v23  ;;  %v2347_v7 = vmul.f32 %v2317_v14, %v2303_v26 }
 0x1bd   :  { %v2359_v28 = vadd.f32 %v2347_v7, %v2346_v27 }
 0x230   :  { %v2134_v30 = vpop.f32.mrb[4].mxu1 }
 0x231   :  { %v2688_v31 = vadd.f32 %v2134_v30, %v396_v35  ;;  %v2136_v32 = vpop.f32.mrb[5].mxu1 }
 0x232   :  { %v2689_v34 = vadd.f32 %v2136_v32, %v400_v49  ;;  %v2138_v36 = vpop.f32.mrb[6].mxu1 }
 0x233   :  { %v2274_v37 = vmax.f32 %v2688_v31, 0.0  ;;  %v2690_v40 = vadd.f32 %v2138_v36, %v396_v35  ;;  %v2140_v41 = vpop.f32.mrb[7].mxu1  ;;  %v2679_v31 = vld [vmem:[#allocation2] ss:$0 sm:$0xff] }
 0x234   :  { %v2275_v42 = vmax.f32 %v2689_v34, 0.0  ;;  %v2691_v45 = vadd.f32 %v2140_v41, %v400_v49 }
 0x235   :  { %v2298_v46 = vmul.f32 %v2286_v33, %v2274_v37  ;;  %v2280_v47 = vmax.f32 %v2690_v40, 0.0 }
 0x236   :  { %v2299_v51 = vmul.f32 %v2287_v39, %v2275_v42  ;;  %v2281_v52 = vmax.f32 %v2691_v45, 0.0 }
 0x237   :  { %v2342_v53 = vmul.f32 %v2321_v38, %v2298_v46  ;;  %v2304_v55 = vmul.f32 %v2292_v44, %v2280_v47 }
 0x238   :  { %v2343_v57 = vmul.f32 %v2325_v43, %v2299_v51  ;;  %v2305_v58 = vmul.f32 %v2293_v48, %v2281_v52 }
 0x239   :  { %v2348_v59 = vmul.f32 %v2321_v38, %v2304_v55  ;;  %v2353_v60 = vadd.f32 %v2352_v8, %v2342_v53 }
 0x23a   :  { %v2349_v62 = vmul.f32 %v2325_v43, %v2305_v58 }
 0x23b   :  { %v2360_v63 = vadd.f32 %v2359_v28, %v2348_v59  ;;  %v2354_v0 = vadd.f32 %v2353_v60, %v2343_v57 }
 0x23d   :  { %v2361_v12 = vadd.f32 %v2360_v63, %v2349_v62 }
 0x271   :  { %v2263_v5 = vpop.f32.mrb[4].mxu0 }
 0x272   :  { %v2692_v6 = vadd.f32 %v2263_v5, %v404_v3  ;;  %v2265_v9 = vpop.f32.mrb[5].mxu0 }
 0x273   :  { %v2693_v11 = vadd.f32 %v2265_v9, %v408_v4  ;;  %v2267_v13 = vpop.f32.mrb[6].mxu0 }
 0x274   :  { %v2276_v14 = vmax.f32 %v2692_v6, 0.0  ;;  %v2694_v17 = vadd.f32 %v2267_v13, %v404_v3  ;;  %v2269_v18 = vpop.f32.mrb[7].mxu0 }
 0x275   :  { %v2277_v19 = vmax.f32 %v2693_v11, 0.0  ;;  %v2695_v21 = vadd.f32 %v2269_v18, %v408_v4 }
 0x276   :  { %v2300_v22 = vmul.f32 %v2288_v10, %v2276_v14  ;;  %v2282_v23 = vmax.f32 %v2694_v17, 0.0 }
 0x277   :  { %v2301_v24 = vmul.f32 %v2289_v16, %v2277_v19  ;;  %v2283_v25 = vmax.f32 %v2695_v21, 0.0 }
 0x278   :  { %v2306_v26 = vmul.f32 %v2294_v20, %v2282_v23  ;;  %v2344_v27 = vmul.f32 %v2329_v15, %v2300_v22 }
 0x279   :  { %v2307_v8 = vmul.f32 %v2295_v56, %v2283_v25  ;;  %v2345_v7 = vmul.f32 %v2333_v54, %v2301_v24 }
 0x27a   :  { %v2350_v28 = vmul.f32 %v2329_v15, %v2306_v26  ;;  %v2355_v29 = vadd.f32 %v2354_v0, %v2344_v27 }
 0x27b   :  { %v2351_v50 = vmul.f32 %v2333_v54, %v2307_v8 }
 0x27c   :  { %v2356_v35 = vadd.f32 %v2355_v29, %v2345_v7  ;;  %v2362_v49 = vadd.f32 %v2361_v12, %v2350_v28 }
 0x27e   :  { %2357 = vadd.xlane.f32.xlu0 %v2356_v35  ;;  %v2363_v30 = vadd.f32 %v2362_v49, %v2351_v50 }
 0x282   :  { %2364 = vadd.xlane.f32.xlu0 %v2363_v30 }
 0x30b   :  { %v2358_v61 = vpop.xlane.xlu0 %2357 }
 0x30c   :  { %v2373_v32 = vadd.f32 %v2679_v31, %v2358_v61 }
 0x30e   :  { %2376 = vst.msk [vmem:[%s3461_s6] sm:$0xff] %vm2375_vm0, %v2373_v32 }
 0x30f   :  { %v2365_v33 = vpop.xlane.xlu0 %2364 }
 0x310   :  { %v2374_v34 = vadd.f32 %v2679_v31, %v2365_v33 }
 0x312   :  { %2377 = vst.msk [vmem:[%s3461_s6 + $0x8] sm:$0xff] %vm2375_vm0, %v2374_v34 }
 0x313   :  { %2382 = vsyncpa [#allocation4], 1 }
 0x314   :  { %2383 = vsyncpa [#allocation6], 1 }
 0x315   :  { %2384 = vsyncpa [#allocation9], 1 }

</bundles_post_ra>
